<compile_context>
chip_gen: v5e
topology: v5e:2x2
jax: 0.10.0
libtpu: 0.0.40
codegen_flags: <defaults>
</compile_context>

<pallas_src>
import functools

import jax
import jax.numpy as jnp
from jax import lax
from jax.experimental import pallas as pl
from jax.experimental.pallas import tpu as pltpu


def _attention_kernel(xq_ref, xk_ref, res_ref, wq_ref, wkv_ref, wo_ref,
                      bq_ref, bv_ref, bo_ref, o_ref,
                      q_scr, m_scr, l_scr, acc_scr, *, channels, scale):
    c = channels
    ki = pl.program_id(2)

    @pl.when(ki == 0)
    def _init():
        # Q projection for this q tile — computed once, reused across kv tiles.
        q = jnp.dot(xq_ref[...], wq_ref[...],
                    preferred_element_type=jnp.float32) + bq_ref[...]
        q_scr[...] = q.astype(jnp.bfloat16)
        m_scr[...] = jnp.full(m_scr.shape, -jnp.inf, jnp.float32)
        l_scr[...] = jnp.zeros(l_scr.shape, jnp.float32)
        acc_scr[...] = jnp.zeros(acc_scr.shape, jnp.float32)

    # Fused K/V projection for this kv tile (single MXU op instead of two).
    kv = jnp.dot(xk_ref[...], wkv_ref[...], preferred_element_type=jnp.float32)
    # Key bias adds a per-query constant to every score -> exact softmax no-op,
    # so it is dropped (saves a full-tile VPU add and one bias DMA).
    k = kv[:, :c].astype(jnp.bfloat16)
    v = (kv[:, c:] + bv_ref[...]).astype(jnp.bfloat16)

    # Scores: contract over channels directly (rhs-transposed matmul, no k.T).
    s = lax.dot_general(q_scr[...], k,
                        dimension_numbers=(((1,), (1,)), ((), ())),
                        preferred_element_type=jnp.float32) * scale

    # Online softmax (f32 elementwise math).
    m_prev = m_scr[...]
    m_new = jnp.maximum(m_prev, jnp.max(s, axis=-1, keepdims=True))
    alpha = jnp.exp(m_prev - m_new)
    p = jnp.exp(s - m_new)
    l_scr[...] = alpha * l_scr[...] + jnp.sum(p, axis=-1, keepdims=True)
    acc_scr[...] = alpha * acc_scr[...] + jnp.dot(
        p.astype(jnp.bfloat16), v, preferred_element_type=jnp.float32)
    m_scr[...] = m_new

    @pl.when(ki == pl.num_programs(2) - 1)
    def _finalize():
        # Deferred normalization on the small (tq, C) accumulator (EUP recip).
        o = acc_scr[...] * pl.reciprocal(l_scr[...], approx=True)
        out = jnp.dot(o.astype(jnp.bfloat16), wo_ref[...],
                      preferred_element_type=jnp.float32) + bo_ref[...]
        o_ref[...] = out + res_ref[...]


def _pick_tile(s):
    """Largest MXU-friendly tile (multiple of 128) dividing S, else full S."""
    for t in (512, 256, 128):
        if s % t == 0:
            return t
    return s


def vae_attention_block(x, params, *, tile=None):
    """x: (N, C, H, W) float32.  Returns (N, C, H, W) float32."""
    n, c, h, w = x.shape
    s = h * w

    W_in, b_in = params["W_in"], params["b_in"]
    W_out, b_out = params["W_out"], params["b_out"]

    # nn.Linear computes x @ W.T + b; pre-transpose, fuse K/V weights, bf16 MXU.
    wq = W_in[:c, :].T.astype(jnp.bfloat16)            # (C, C)
    wkv = W_in[c:, :].T.astype(jnp.bfloat16)           # (C, 2C)  [K | V]
    wo = W_out.T.astype(jnp.bfloat16)                  # (C, C)
    bq = b_in[:c].reshape(1, c).astype(jnp.float32)
    bv = b_in[2 * c:].reshape(1, c).astype(jnp.float32)
    bo = b_out.reshape(1, c).astype(jnp.float32)
    # b_in[c:2c] (key bias) intentionally dropped: it is softmax-invariant.

    # Sequence layout (N, S, C) in bf16: one XLA pass, halves all streamed bytes.
    x_seq = jnp.transpose(x.reshape(n, c, s), (0, 2, 1)).astype(jnp.bfloat16)
    # Residual as the raw-buffer (N, S, C) reinterpretation used by the .view().
    x_res = x.reshape(n, s, c)

    if tile is None:
        tile = _pick_tile(s)
    assert s % tile == 0, "tile must divide H*W"
    tq = tk = tile
    nq, nk = s // tq, s // tk

    kernel = functools.partial(_attention_kernel, channels=c,
                               scale=1.0 / float(c) ** 0.5)

    out_seq = pl.pallas_call(
        kernel,
        out_shape=jax.ShapeDtypeStruct((n, s, c), jnp.float32),
        grid_spec=pltpu.PrefetchScalarGridSpec(
            num_scalar_prefetch=0,
            grid=(n, nq, nk),
            in_specs=[
                pl.BlockSpec((None, tq, c), lambda b, qi, ki: (b, qi, 0)),  # x (q rows)
                pl.BlockSpec((None, tk, c), lambda b, qi, ki: (b, ki, 0)),  # x (kv rows)
                pl.BlockSpec((None, tq, c), lambda b, qi, ki: (b, qi, 0)),  # residual
                pl.BlockSpec((c, c),        lambda b, qi, ki: (0, 0)),      # wq
                pl.BlockSpec((c, 2 * c),    lambda b, qi, ki: (0, 0)),      # wkv
                pl.BlockSpec((c, c),        lambda b, qi, ki: (0, 0)),      # wo
                pl.BlockSpec((1, c),        lambda b, qi, ki: (0, 0)),      # bq
                pl.BlockSpec((1, c),        lambda b, qi, ki: (0, 0)),      # bv
                pl.BlockSpec((1, c),        lambda b, qi, ki: (0, 0)),      # bo
            ],
            out_specs=pl.BlockSpec((None, tq, c), lambda b, qi, ki: (b, qi, 0)),
            scratch_shapes=[
                pltpu.VMEM((tq, c), jnp.bfloat16),   # q tile (bf16 for MXU)
                pltpu.VMEM((tq, 1), jnp.float32),    # running max  m
                pltpu.VMEM((tq, 1), jnp.float32),    # running sum  l
                pltpu.VMEM((tq, c), jnp.float32),    # un-normalized output acc
            ],
        ),
        compiler_params=pltpu.CompilerParams(
            dimension_semantics=("parallel", "parallel", "arbitrary"),
            vmem_limit_bytes=32 * 1024 * 1024,
        ),
    )(x_seq, x_seq, x_res, wq, wkv, wo, bq, bv, bo)

    # `.transpose(-1, 2)` in the source is a no-op; `.view` reinterprets memory.
    return out_seq.reshape(n, c, h, w)


def ref_forward(x, params):
    """Pure-JAX f32 reference reproducing the PyTorch forward exactly."""
    n, c, h, w = x.shape
    residual = x
    xs = jnp.transpose(x.reshape(n, c, h * w), (0, 2, 1))
    qkv = xs @ params["W_in"].T + params["b_in"]
    q, k, v = jnp.split(qkv, 3, axis=-1)
    wgt = jnp.einsum("nsc,ntc->nst", q, k) / jnp.sqrt(jnp.float32(c))
    wgt = jax.nn.softmax(wgt, axis=-1)
    o = jnp.einsum("nst,ntc->nsc", wgt, v)
    o = o @ params["W_out"].T + params["b_out"]
    o = o.reshape(n, c, h, w)          # transpose(-1,2) no-op + view reinterpret
    return o + residual


def init_params(key, channels):
    k1, k2, k3, k4 = jax.random.split(key, 4)
    return {
        # SelfAttention(1, channels): in_proj Linear(C, 3C), out_proj Linear(C, C)
        "W_in": 0.05 * jax.random.normal(k1, (3 * channels, channels), jnp.float32),
        "b_in": 0.05 * jax.random.normal(k2, (3 * channels,), jnp.float32),
        "W_out": 0.05 * jax.random.normal(k3, (channels, channels), jnp.float32),
        "b_out": 0.05 * jax.random.normal(k4, (channels,), jnp.float32),
        # GroupNorm(32, channels) params exist in __init__ but are NOT used in
        # the given forward() — kept here only for parameter-shape parity.
        "gn_weight": jnp.ones((channels,), jnp.float32),
        "gn_bias": jnp.zeros((channels,), jnp.float32),
    }


if __name__ == "__main__":
    # channels divisible by 32 (GroupNorm(32, C) construct parity) and lane-aligned.
    N, C, H, W = 2, 128, 16, 16           # S = 256
    key = jax.random.PRNGKey(0)
    kx, kp = jax.random.split(key)
    x = jax.random.normal(kx, (N, C, H, W), jnp.float32)
    params = init_params(kp, C)

    # tile=128 -> grid (N, 2, 2): exercises the multi-step online-softmax path.
    out = jax.block_until_ready(vae_attention_block(x, params, tile=128))
    ref = jax.block_until_ready(ref_forward(x, params))

    assert out.shape == (N, C, H, W)
    # bf16 MXU operands + approx reciprocal -> tolerance loosened vs f32 reference.
    assert jnp.allclose(out, ref, atol=2e-2, rtol=2e-2), "mismatch vs reference"
    print("KERNEL_OK")
</pallas_src>

<mosaic_0001>
module attributes {stable_mosaic.version = 11 : i64} {
  func.func @_attention_kernel(%arg0: i32, %arg1: i32, %arg2: i32, %arg3: memref<1x128x128xbf16, #tpu.memory_space<vmem>>, %arg4: memref<1x128x128xbf16, #tpu.memory_space<vmem>>, %arg5: memref<1x128x128xf32, #tpu.memory_space<vmem>>, %arg6: memref<128x128xbf16, #tpu.memory_space<vmem>>, %arg7: memref<128x256xbf16, #tpu.memory_space<vmem>>, %arg8: memref<128x128xbf16, #tpu.memory_space<vmem>>, %arg9: memref<1x128xf32, #tpu.memory_space<vmem>>, %arg10: memref<1x128xf32, #tpu.memory_space<vmem>>, %arg11: memref<1x128xf32, #tpu.memory_space<vmem>>, %arg12: memref<1x128x128xf32, #tpu.memory_space<vmem>>, %arg13: memref<128x128xbf16, #tpu.memory_space<vmem>>, %arg14: memref<128x1xf32, #tpu.memory_space<vmem>>, %arg15: memref<128x1xf32, #tpu.memory_space<vmem>>, %arg16: memref<128x128xf32, #tpu.memory_space<vmem>>) attributes {dimension_semantics = [#tpu.dimension_semantics<parallel>, #tpu.dimension_semantics<parallel>, #tpu.dimension_semantics<arbitrary>], iteration_bounds = array<i64: 2, 2, 2>, scalar_prefetch = 0 : i64, scratch_operands = 4 : i64, tpu.core_type = #tpu.core_type<tc>, window_params = [{transform_indices = @transform_0, window_bounds = array<i64: 1, 128, 128>}, {transform_indices = @transform_1, window_bounds = array<i64: 1, 128, 128>}, {transform_indices = @transform_2, window_bounds = array<i64: 1, 128, 128>}, {pipeline_mode = #tpu.pipeline_mode<synchronous>, transform_indices = @transform_3, window_bounds = array<i64: 128, 128>}, {pipeline_mode = #tpu.pipeline_mode<synchronous>, transform_indices = @transform_4, window_bounds = array<i64: 128, 256>}, {pipeline_mode = #tpu.pipeline_mode<synchronous>, transform_indices = @transform_5, window_bounds = array<i64: 128, 128>}, {pipeline_mode = #tpu.pipeline_mode<synchronous>, transform_indices = @transform_6, window_bounds = array<i64: 1, 128>}, {pipeline_mode = #tpu.pipeline_mode<synchronous>, transform_indices = @transform_7, window_bounds = array<i64: 1, 128>}, {pipeline_mode = #tpu.pipeline_mode<synchronous>, transform_indices = @transform_8, window_bounds = array<i64: 1, 128>}, {transform_indices = @transform_9, window_bounds = array<i64: 1, 128, 128>}]} {
    %c0_i32 = arith.constant 0 : i32
    %0 = arith.cmpi eq, %arg2, %c0_i32 : i32
    %1 = arith.extui %0 : i1 to i32
    %c0_i32_0 = arith.constant 0 : i32
    %2 = arith.cmpi ne, %1, %c0_i32_0 : i32
    scf.if %2 {
      %c0_27 = arith.constant 0 : index
      %c0_28 = arith.constant 0 : index
      %c0_29 = arith.constant 0 : index
      %44 = vector.load %arg3[%c0_27, %c0_28, %c0_29] : memref<1x128x128xbf16, #tpu.memory_space<vmem>>, vector<1x128x128xbf16>
      %45 = vector.shape_cast %44 : vector<1x128x128xbf16> to vector<128x128xbf16>
      %c0_30 = arith.constant 0 : index
      %c0_31 = arith.constant 0 : index
      %46 = vector.load %arg6[%c0_30, %c0_31] : memref<128x128xbf16, #tpu.memory_space<vmem>>, vector<128x128xbf16>
      %cst_32 = arith.constant dense<0.000000e+00> : vector<128x128xf32>
      %47 = tpu.matmul %45, %46, %cst_32 {dimension_numbers = #tpu.dot_dimension_numbers<[1], [0], [0], [1], [0, 0, 1, 1], [], []>} : vector<128x128xbf16>, vector<128x128xbf16>, vector<128x128xf32> -> vector<128x128xf32>
      %c0_33 = arith.constant 0 : index
      %c0_34 = arith.constant 0 : index
      %48 = vector.load %arg9[%c0_33, %c0_34] : memref<1x128xf32, #tpu.memory_space<vmem>>, vector<1x128xf32>
      %49 = vector.broadcast %48 : vector<1x128xf32> to vector<128x128xf32>
      %50 = arith.addf %47, %49 : vector<128x128xf32>
      %51 = arith.truncf %50 : vector<128x128xf32> to vector<128x128xbf16>
      %c0_35 = arith.constant 0 : index
      %c0_36 = arith.constant 0 : index
      %52 = vector.load %arg13[%c0_35, %c0_36] : memref<128x128xbf16, #tpu.memory_space<vmem>>, vector<128x128xbf16>
      tpu.vector_store %arg13[%c0_35, %c0_36], %51 {strides = array<i32>} : memref<128x128xbf16, #tpu.memory_space<vmem>>, vector<128x128xbf16>,
      %cst_37 = arith.constant 0xFF800000 : f32
      %53 = vector.broadcast %cst_37 : f32 to vector<128x1xf32>
      %c0_38 = arith.constant 0 : index
      %c0_39 = arith.constant 0 : index
      %54 = vector.load %arg14[%c0_38, %c0_39] : memref<128x1xf32, #tpu.memory_space<vmem>>, vector<128x1xf32>
      tpu.vector_store %arg14[%c0_38, %c0_39], %53 {strides = array<i32>} : memref<128x1xf32, #tpu.memory_space<vmem>>, vector<128x1xf32>,
      %cst_40 = arith.constant 0.000000e+00 : f32
      %55 = vector.broadcast %cst_40 : f32 to vector<128x1xf32>
      %c0_41 = arith.constant 0 : index
      %c0_42 = arith.constant 0 : index
      %56 = vector.load %arg15[%c0_41, %c0_42] : memref<128x1xf32, #tpu.memory_space<vmem>>, vector<128x1xf32>
      tpu.vector_store %arg15[%c0_41, %c0_42], %55 {strides = array<i32>} : memref<128x1xf32, #tpu.memory_space<vmem>>, vector<128x1xf32>,
      %cst_43 = arith.constant 0.000000e+00 : f32
      %57 = vector.broadcast %cst_43 : f32 to vector<128x128xf32>
      %c0_44 = arith.constant 0 : index
      %c0_45 = arith.constant 0 : index
      %58 = vector.load %arg16[%c0_44, %c0_45] : memref<128x128xf32, #tpu.memory_space<vmem>>, vector<128x128xf32>
      tpu.vector_store %arg16[%c0_44, %c0_45], %57 {strides = array<i32>} : memref<128x128xf32, #tpu.memory_space<vmem>>, vector<128x128xf32>,
    } else {
    }
    %c0 = arith.constant 0 : index
    %c0_1 = arith.constant 0 : index
    %c0_2 = arith.constant 0 : index
    %3 = vector.load %arg4[%c0, %c0_1, %c0_2] : memref<1x128x128xbf16, #tpu.memory_space<vmem>>, vector<1x128x128xbf16>
    %4 = vector.shape_cast %3 : vector<1x128x128xbf16> to vector<128x128xbf16>
    %c0_3 = arith.constant 0 : index
    %c0_4 = arith.constant 0 : index
    %5 = vector.load %arg7[%c0_3, %c0_4] : memref<128x256xbf16, #tpu.memory_space<vmem>>, vector<128x256xbf16>
    %cst = arith.constant dense<0.000000e+00> : vector<128x256xf32>
    %6 = tpu.matmul %4, %5, %cst {dimension_numbers = #tpu.dot_dimension_numbers<[1], [0], [0], [1], [0, 0, 1, 1], [], []>} : vector<128x128xbf16>, vector<128x256xbf16>, vector<128x256xf32> -> vector<128x256xf32>
    %7 = vector.extract_strided_slice %6 {offsets = [0, 0], sizes = [128, 128], strides = [1, 1]} : vector<128x256xf32> to vector<128x128xf32>
    %8 = arith.truncf %7 : vector<128x128xf32> to vector<128x128xbf16>
    %9 = vector.extract_strided_slice %6 {offsets = [0, 128], sizes = [128, 128], strides = [1, 1]} : vector<128x256xf32> to vector<128x128xf32>
    %c0_5 = arith.constant 0 : index
    %c0_6 = arith.constant 0 : index
    %10 = vector.load %arg10[%c0_5, %c0_6] : memref<1x128xf32, #tpu.memory_space<vmem>>, vector<1x128xf32>
    %11 = vector.broadcast %10 : vector<1x128xf32> to vector<128x128xf32>
    %12 = arith.addf %9, %11 : vector<128x128xf32>
    %13 = arith.truncf %12 : vector<128x128xf32> to vector<128x128xbf16>
    %c0_7 = arith.constant 0 : index
    %c0_8 = arith.constant 0 : index
    %14 = vector.load %arg13[%c0_7, %c0_8] : memref<128x128xbf16, #tpu.memory_space<vmem>>, vector<128x128xbf16>
    %cst_9 = arith.constant dense<0.000000e+00> : vector<128x128xf32>
    %15 = tpu.matmul %14, %8, %cst_9 {dimension_numbers = #tpu.dot_dimension_numbers<[1], [1], [0], [0], [0, 0, 1, 0], [], []>} : vector<128x128xbf16>, vector<128x128xbf16>, vector<128x128xf32> -> vector<128x128xf32>
    %cst_10 = arith.constant 0.0883883461 : f32
    %16 = vector.broadcast %cst_10 : f32 to vector<128x128xf32>
    %17 = arith.mulf %15, %16 : vector<128x128xf32>
    %c0_11 = arith.constant 0 : index
    %c0_12 = arith.constant 0 : index
    %18 = vector.load %arg14[%c0_11, %c0_12] : memref<128x1xf32, #tpu.memory_space<vmem>>, vector<128x1xf32>
    %cst_13 = arith.constant dense<0xFF800000> : vector<128xf32>
    %19 = vector.multi_reduction <maximumf>, %17, %cst_13 [1] : vector<128x128xf32> to vector<128xf32>
    %20 = vector.shape_cast %19 : vector<128xf32> to vector<128x1xf32>
    %21 = arith.maximumf %18, %20 : vector<128x1xf32>
    %22 = arith.subf %18, %21 : vector<128x1xf32>
    %23 = math.exp %22 : vector<128x1xf32>
    %24 = vector.broadcast %21 : vector<128x1xf32> to vector<128x128xf32>
    %25 = arith.subf %17, %24 : vector<128x128xf32>
    %26 = math.exp %25 : vector<128x128xf32>
    %c0_14 = arith.constant 0 : index
    %c0_15 = arith.constant 0 : index
    %27 = vector.load %arg15[%c0_14, %c0_15] : memref<128x1xf32, #tpu.memory_space<vmem>>, vector<128x1xf32>
    %28 = arith.mulf %23, %27 : vector<128x1xf32>
    %cst_16 = arith.constant dense<0.000000e+00> : vector<128xf32>
    %29 = vector.multi_reduction <add>, %26, %cst_16 [1] : vector<128x128xf32> to vector<128xf32>
    %30 = vector.shape_cast %29 : vector<128xf32> to vector<128x1xf32>
    %31 = arith.addf %28, %30 : vector<128x1xf32>
    %c0_17 = arith.constant 0 : index
    %c0_18 = arith.constant 0 : index
    %32 = vector.load %arg15[%c0_17, %c0_18] : memref<128x1xf32, #tpu.memory_space<vmem>>, vector<128x1xf32>
    tpu.vector_store %arg15[%c0_17, %c0_18], %31 {strides = array<i32>} : memref<128x1xf32, #tpu.memory_space<vmem>>, vector<128x1xf32>,
    %c0_19 = arith.constant 0 : index
    %c0_20 = arith.constant 0 : index
    %33 = vector.load %arg16[%c0_19, %c0_20] : memref<128x128xf32, #tpu.memory_space<vmem>>, vector<128x128xf32>
    %34 = vector.broadcast %23 : vector<128x1xf32> to vector<128x128xf32>
    %35 = arith.mulf %34, %33 : vector<128x128xf32>
    %36 = arith.truncf %26 : vector<128x128xf32> to vector<128x128xbf16>
    %cst_21 = arith.constant dense<0.000000e+00> : vector<128x128xf32>
    %37 = tpu.matmul %36, %13, %cst_21 {dimension_numbers = #tpu.dot_dimension_numbers<[1], [0], [0], [1], [0, 0, 1, 1], [], []>} : vector<128x128xbf16>, vector<128x128xbf16>, vector<128x128xf32> -> vector<128x128xf32>
    %38 = arith.addf %35, %37 : vector<128x128xf32>
    %c0_22 = arith.constant 0 : index
    %c0_23 = arith.constant 0 : index
    %39 = vector.load %arg16[%c0_22, %c0_23] : memref<128x128xf32, #tpu.memory_space<vmem>>, vector<128x128xf32>
    tpu.vector_store %arg16[%c0_22, %c0_23], %38 {strides = array<i32>} : memref<128x128xf32, #tpu.memory_space<vmem>>, vector<128x128xf32>,
    %c0_24 = arith.constant 0 : index
    %c0_25 = arith.constant 0 : index
    %40 = vector.load %arg14[%c0_24, %c0_25] : memref<128x1xf32, #tpu.memory_space<vmem>>, vector<128x1xf32>
    tpu.vector_store %arg14[%c0_24, %c0_25], %21 {strides = array<i32>} : memref<128x1xf32, #tpu.memory_space<vmem>>, vector<128x1xf32>,
    %c1_i32 = arith.constant 1 : i32
    %41 = arith.cmpi eq, %arg2, %c1_i32 : i32
    %42 = arith.extui %41 : i1 to i32
    %c0_i32_26 = arith.constant 0 : i32
    %43 = arith.cmpi ne, %42, %c0_i32_26 : i32
    scf.if %43 {
      %c0_27 = arith.constant 0 : index
      %c0_28 = arith.constant 0 : index
      %44 = vector.load %arg16[%c0_27, %c0_28] : memref<128x128xf32, #tpu.memory_space<vmem>>, vector<128x128xf32>
      %c0_29 = arith.constant 0 : index
      %c0_30 = arith.constant 0 : index
      %45 = vector.load %arg15[%c0_29, %c0_30] : memref<128x1xf32, #tpu.memory_space<vmem>>, vector<128x1xf32>
      %46 = tpu.reciprocal %45 {approx = true} : vector<128x1xf32> -> vector<128x1xf32>
      %47 = vector.broadcast %46 : vector<128x1xf32> to vector<128x128xf32>
      %48 = arith.mulf %44, %47 : vector<128x128xf32>
      %49 = arith.truncf %48 : vector<128x128xf32> to vector<128x128xbf16>
      %c0_31 = arith.constant 0 : index
      %c0_32 = arith.constant 0 : index
      %50 = vector.load %arg8[%c0_31, %c0_32] : memref<128x128xbf16, #tpu.memory_space<vmem>>, vector<128x128xbf16>
      %cst_33 = arith.constant dense<0.000000e+00> : vector<128x128xf32>
      %51 = tpu.matmul %49, %50, %cst_33 {dimension_numbers = #tpu.dot_dimension_numbers<[1], [0], [0], [1], [0, 0, 1, 1], [], []>} : vector<128x128xbf16>, vector<128x128xbf16>, vector<128x128xf32> -> vector<128x128xf32>
      %c0_34 = arith.constant 0 : index
      %c0_35 = arith.constant 0 : index
      %52 = vector.load %arg11[%c0_34, %c0_35] : memref<1x128xf32, #tpu.memory_space<vmem>>, vector<1x128xf32>
      %53 = vector.broadcast %52 : vector<1x128xf32> to vector<128x128xf32>
      %54 = arith.addf %51, %53 : vector<128x128xf32>
      %c0_36 = arith.constant 0 : index
      %c0_37 = arith.constant 0 : index
      %c0_38 = arith.constant 0 : index
      %55 = vector.load %arg5[%c0_36, %c0_37, %c0_38] : memref<1x128x128xf32, #tpu.memory_space<vmem>>, vector<1x128x128xf32>
      %56 = vector.shape_cast %55 : vector<1x128x128xf32> to vector<128x128xf32>
      %57 = arith.addf %54, %56 : vector<128x128xf32>
      %c0_39 = arith.constant 0 : index
      %c0_40 = arith.constant 0 : index
      %c0_41 = arith.constant 0 : index
      %58 = vector.load %arg12[%c0_39, %c0_40, %c0_41] : memref<1x128x128xf32, #tpu.memory_space<vmem>>, vector<1x128x128xf32>
      %59 = vector.shape_cast %58 : vector<1x128x128xf32> to vector<128x128xf32>
      %60 = vector.shape_cast %57 : vector<128x128xf32> to vector<1x128x128xf32>
      tpu.vector_store %arg12[%c0_39, %c0_40, %c0_41], %60 {strides = array<i32>} : memref<1x128x128xf32, #tpu.memory_space<vmem>>, vector<1x128x128xf32>,
    } else {
    }
    return
  }
  func.func @transform_0(%arg0: i32, %arg1: i32, %arg2: i32) -> (i32, i32, i32) {
    %c0_i32 = arith.constant 0 : i32
    %c0_i32_0 = arith.constant 0 : i32
    return %arg0, %arg1, %c0_i32 : i32, i32, i32
  }
  func.func @transform_1(%arg0: i32, %arg1: i32, %arg2: i32) -> (i32, i32, i32) {
    %c0_i32 = arith.constant 0 : i32
    %c0_i32_0 = arith.constant 0 : i32
    return %arg0, %arg2, %c0_i32 : i32, i32, i32
  }
  func.func @transform_2(%arg0: i32, %arg1: i32, %arg2: i32) -> (i32, i32, i32) {
    %c0_i32 = arith.constant 0 : i32
    %c0_i32_0 = arith.constant 0 : i32
    return %arg0, %arg1, %c0_i32 : i32, i32, i32
  }
  func.func @transform_3(%arg0: i32, %arg1: i32, %arg2: i32) -> (i32, i32) {
    %c0_i32 = arith.constant 0 : i32
    %c0_i32_0 = arith.constant 0 : i32
    %c0_i32_1 = arith.constant 0 : i32
    return %c0_i32, %c0_i32_0 : i32, i32
  }
  func.func @transform_4(%arg0: i32, %arg1: i32, %arg2: i32) -> (i32, i32) {
    %c0_i32 = arith.constant 0 : i32
    %c0_i32_0 = arith.constant 0 : i32
    %c0_i32_1 = arith.constant 0 : i32
    return %c0_i32, %c0_i32_0 : i32, i32
  }
  func.func @transform_5(%arg0: i32, %arg1: i32, %arg2: i32) -> (i32, i32) {
    %c0_i32 = arith.constant 0 : i32
    %c0_i32_0 = arith.constant 0 : i32
    %c0_i32_1 = arith.constant 0 : i32
    return %c0_i32, %c0_i32_0 : i32, i32
  }
  func.func @transform_6(%arg0: i32, %arg1: i32, %arg2: i32) -> (i32, i32) {
    %c0_i32 = arith.constant 0 : i32
    %c0_i32_0 = arith.constant 0 : i32
    %c0_i32_1 = arith.constant 0 : i32
    return %c0_i32, %c0_i32_0 : i32, i32
  }
  func.func @transform_7(%arg0: i32, %arg1: i32, %arg2: i32) -> (i32, i32) {
    %c0_i32 = arith.constant 0 : i32
    %c0_i32_0 = arith.constant 0 : i32
    %c0_i32_1 = arith.constant 0 : i32
    return %c0_i32, %c0_i32_0 : i32, i32
  }
  func.func @transform_8(%arg0: i32, %arg1: i32, %arg2: i32) -> (i32, i32) {
    %c0_i32 = arith.constant 0 : i32
    %c0_i32_0 = arith.constant 0 : i32
    %c0_i32_1 = arith.constant 0 : i32
    return %c0_i32, %c0_i32_0 : i32, i32
  }
  func.func @transform_9(%arg0: i32, %arg1: i32, %arg2: i32) -> (i32, i32, i32) {
    %c0_i32 = arith.constant 0 : i32
    %c0_i32_0 = arith.constant 0 : i32
    return %arg0, %arg1, %c0_i32 : i32, i32, i32
  }
}

</mosaic_0001>

<bundles_post_ra>
// kernel: tpu_custom_call.1
= control target key start
LH: loop header
LB: loop body
LE: loop exit
PB: predicated region body
PF: predicated region fallthrough
CT: control target
= control target key end

     0   :  { %s4283_s0 = inlined_call_operand.hbm [shape: bf16[2,256,128], index: 0, kind: input, shape index: {}]   ;;  %s4284_s1 = inlined_call_operand.hbm [shape: bf16[2,256,128], index: 1, kind: input, shape index: {}]   ;;  %s4285_s2 = inlined_call_operand.hbm [shape: f32[2,256,128], index: 2, kind: input, shape index: {}]   ;;  %s4286_s3 = inlined_call_operand.hbm [shape: bf16[128,128], index: 3, kind: input, shape index: {}]   ;;  %s4287_s4 = inlined_call_operand.hbm [shape: bf16[128,256], index: 4, kind: input, shape index: {}]   ;;  %s4288_s5 = inlined_call_operand.hbm [shape: bf16[128,128], index: 5, kind: input, shape index: {}]   ;;  %s4289_s6 = inlined_call_operand.vmem [shape: f32[1,128], index: 6, kind: input, shape index: {}]   ;;  %s4290_s7 = inlined_call_operand.vmem [shape: f32[1,128], index: 7, kind: input, shape index: {}]   ;;  %s4291_s8 = inlined_call_operand.vmem [shape: f32[1,128], index: 8, kind: input, shape index: {}]   ;;  %s4292_s9 = inlined_call_operand.hbm [shape: f32[2,256,128], index: 9, kind: output, shape index: {}]  }
   0x1   :  { %4316 = sst [smem:[#allocation38_spill]] %s4283_s0 }
   0x2   :  { %4317 = sst [smem:[#allocation39_spill]] %s4284_s1 }
   0x3   :  { %4318 = sst [smem:[#allocation40_spill]] %s4285_s2 }
   0x4   :  { %4319 = sst [smem:[#allocation41_spill]] %s4286_s3 }
   0x5   :  { %4320 = sst [smem:[#allocation42_spill]] %s4287_s4 }
   0x6   :  { %4321 = sst [smem:[#allocation43_spill]] %s4288_s5 }
   0x7   :  { %4322 = sst [smem:[#allocation44_spill]] %s4289_s6 }
   0x8   :  { %4323 = sst [smem:[#allocation45_spill]] %s4290_s7 }
   0x9   :  { %4324 = sst [smem:[#allocation46_spill]] %s4291_s8 }
   0xa   :  { %4325 = sst [smem:[#allocation47_spill]] %s4292_s9 }
   0xb   :  { %14 = vsyncpa [#allocation7], 0 }
   0xc   :  { %16 = vsyncpa [#allocation7 + $0x1], 0 }
   0xd   :  { %17 = vsyncpa [#allocation10], 0 }
   0xe   :  { %19 = vsyncpa [#allocation10 + $0x1], 0 }
   0xf   :  { %20 = vsyncpa [#allocation13], 0 }
  0x10   :  { %21 = vsyncpa [#allocation16], 0 }
  0x11   :  { %22 = vsyncpa [#allocation8], 0 }
  0x12   :  { %24 = vsyncpa [#allocation8 + $0x1], 0  ;;  %s3368_s30 = smov 0   ;;  %s3370_s10 = smov 0  }
  0x13   :  { %s3372_s11 = smov 0   ;;  %s3374_s12 = smov 0  }
  0x14   :  { %s3376_s13 = smov 0   ;;  %s3378_s14 = smov 0  }
  0x15   :  { %s3380_s15 = smov 0   ;;  %s3382_s16 = smov 0  }
  0x16   :  { %s3384_s17 = smov 0   ;;  %s3386_s18 = smov 0  }
  0x17   :  { %s3388_s19 = smov 0   ;;  %s3390_s20 = smov 0  }
  0x18   :  { %s3392_s21 = smov 0  }
  0x19 LB: > { %4326 = sst [smem:[#allocation24_spill]] %s3259_s10  ;;  %s3434_s22 = sadd.s32 4294967295, %s3303_s21   ;;  %s3303_s21 = sphi %s3392_s21, %s30_s21   ;;  %s3299_s20 = sphi %s3390_s20, %s4404_s20   ;;  %s3295_s19 = sphi %s3388_s19, %s4403_s19   ;;  %s3291_s18 = sphi %s3386_s18, %s4402_s18   ;;  %s3287_s17 = sphi %s3384_s17, %s4401_s17   ;;  %s3283_s16 = sphi %s3382_s16, %s4392_s16   ;;  %s3279_s15 = sphi %s3380_s15, %s4400_s15   ;;  %s3275_s14 = sphi %s3378_s14, %s4399_s14   ;;  %s3271_s13 = sphi %s3376_s13, %s4398_s13   ;;  %s3267_s12 = sphi %s3374_s12, %s4397_s12   ;;  %s3263_s11 = sphi %s3372_s11, %s4396_s11   ;;  %s3259_s10 = sphi %s3370_s10, %s4395_s10   ;;  %s3255_s30 = sphi %s3368_s30, %s4390_s30  }
  0x1a   : > { %4327 = sst [smem:[#allocation25_spill]] %s3267_s12  ;;  %p2279_p0 = scmp.ge.s32.totalorder %s3303_s21, 1 }
  0x1b   : > { %4328 = sst [smem:[#allocation26_spill]] %s3279_s15  ;;  %p72_p1 = scmp.eq.s32.totalorder %s3434_s22, 0 }
  0x1c   : > { %4329 = sst [smem:[#allocation27_spill]] %s3283_s16  ;;  %p279_p2 = scmp.eq.s32.totalorder %s3434_s22, 7 }
  0x1d   : > { %4330 = sst [smem:[#allocation28_spill]] %s3287_s17  ;;  %p292_p3 = scmp.lt.s32.totalorder %s3303_s21, 9 }
  0x1e   : > { %4331 = sst [smem:[#allocation29_spill]] %s3295_s19  ;;  %s3305_s27 = smov [#allocation12]  }
  0x1f   : > { %4332 = sst [smem:[#allocation30_spill]] %s3434_s22  ;;  %p3443_p4 = pnand %p2279_p0, %p292_p3 }
  0x20   : > { %s4333_s3 = sld [smem:[#allocation41_spill]]  ;;  %s305_s28 = sshll.u32 %s3305_s27, 4  ;;  %s306_s28 = int_to_ptr.vmem [resolvable:$true] %s305_s28 }
  0x21   : > { %s4334_s26 = scalar_select %p3443_p4, 1, 0 }
  0x22   : > { %p2715_p5 = pneg %p3443_p4  ;;  %s4294_s23 = smov 64  }
  0x23   : > { %4335 = sst [smem:[#allocation31_spill]] %s4334_s26  ;;  %s4296_s24 = smov 4  }
  0x24   : > { %p3451_p6 = pnand %p2715_p5, %p72_p1  ;;  %s42_s27 = sadd.s32 1, %s3291_s18 }
  0x25   : > { %p3462_p7 = scmp.ge.s32.totalorder %s42_s27, 2  ;;  %p66_p8 = scmp.eq.s32.totalorder %s3303_s21, 0 }
  0x26   : > { %s303_s25 = sshll.u32 %s4333_s3, 4  ;;  %p93_p9 = scmp.ne.s32.totalorder %s3263_s11, %s3259_s10  ;;  %s304_s25 = int_to_ptr.hbm [resolvable:$true] %s303_s25 }
  0x27   : > { %2718 = dma.hbm_to_vmem [thread:$0]  (!%p3451_p6), %s304_s25, 1024, %s306_s28, [#allocation13], %s4294_s23, %s4294_s23, %s4296_s24  }
  0x28   : > { %s4406_s27 = smov (%p3462_p7, %s42_s27), 0  ;;  %p3476_p10 = por %p93_p9, %p66_p8 }
  0x29   : > { %p99_p11 = scmp.ne.s32.totalorder %s3259_s10, %s3255_s30  ;;  %p2742_p12 = scmp.lt.s32.totalorder %s3303_s21, 8 }
  0x2a   : > { %s4304_s17 = sshll.u32 %s3299_s20, 5  ;;  %s380_s3 = sand.u32 1, %s3303_s21  }
  0x2b   : > { %p3487_p13 = por %p99_p11, %p72_p1  ;;  %s382_s23 = sand.u32 1, %s3263_s11  }
  0x2c   : > { %s2288_s24 = sshll.u32 %s382_s23, 6  ;;  %s2289_s8 = sshll.u32 %s3291_s18, 4 }
  0x2d   : > { %s4339_s28 = scalar_select %p3487_p13, 1, 0 }
  0x2e   : > { %s389_s7 = sadd.s32 %s2289_s8, %s4304_s17  ;;  %s384_s6 = scalar_lea.vmem [#allocation9], %s2288_s24 }
  0x2f   : > { %4340 = sst [smem:[#allocation32_spill]] %s4339_s28  ;;  %s394_s15 = sshll.u32 %s384_s6, 4  ;;  %s395_s15 = int_to_ptr.vmem [resolvable:$true] %s394_s15 }
  0x30   : > { %s2291_s26 = sshll.u32 %s389_s7, 2  ;;  %s4341_s1 = sld [smem:[#allocation39_spill]] }
  0x31   : > { %p2729_p0 = pnand %p2742_p12, %p3476_p10  ;;  %s4342_s4 = sld [smem:[#allocation42_spill]] }
  0x32   : > { %s3507_s8 = scalar_lea.sflag [#allocation10], %s380_s3  ;;  %s4343_s6 = smov 4  }
  0x33   : > { %s4344_s7 = smov 64   ;;  %s4302_s2 = smov 128  }
  0x34   : > { %s4303_s3 = smov 8   ;;  %s4345_s5 = sld [smem:[#allocation43_spill]] }
  0x35   : > { %s3311_s24 = smov [#allocation15]   ;;  %s45_s30 = sadd.s32 1, %s3295_s19 }
  0x36   : > { %s391_s10 = scalar_lea.hbm %s4341_s1, %s2291_s26  ;;  %s333_s25 = sshll.u32 %s3311_s24, 4  ;;  %s334_s25 = int_to_ptr.vmem [resolvable:$true] %s333_s25 }
  0x37   : > { %s392_s28 = sshll.u32 %s391_s10, 4  ;;  %s317_s23 = sshll.u32 %s4342_s4, 4  ;;  %s393_s28 = int_to_ptr.hbm [resolvable:$true] %s392_s28  ;;  %s318_s23 = int_to_ptr.hbm [resolvable:$true] %s317_s23 }
  0x38   : > { %2731 = dma.hbm_to_vmem [thread:$0]  (!%p2729_p0), %s393_s28, 1024, %s395_s15, %s3507_s8, %s4344_s7, %s4344_s7, %s4343_s6  }
  0x39   : > { %s3308_s10 = smov [#allocation14]   ;;  %s2278_s28 = sadd.s32 4294967294, %s3303_s21  }
  0x3a   : > { %s319_s0 = sshll.u32 %s3308_s10, 4  ;;  %s331_s26 = sshll.u32 %s4345_s5, 4  ;;  %s320_s0 = int_to_ptr.vmem [resolvable:$true] %s319_s0  ;;  %s332_s26 = int_to_ptr.hbm [resolvable:$true] %s331_s26 }
  0x3b   : > { %2721 = dma.hbm_to_vmem [thread:$0]  (!%p3451_p6), %s318_s23, 2048, %s320_s0, [#allocation13], %s4302_s2, %s4302_s2, %s4303_s3  }
  0x3c   : > { %2724 = dma.hbm_to_vmem [thread:$0]  (!%p3451_p6), %s332_s26, 1024, %s334_s25, [#allocation16], %s4344_s7, %s4344_s7, %s4343_s6  }
  0x3d   : > { %s58_s23 = sadd.s32 1, %s3275_s14  ;;  %s4408_s30 = smov (!%p3462_p7, %s45_s30), %s3295_s19 }
  0x3e   : > { %p65_p3 = scmp.ne.s32.totalorder %s3275_s14, %s3271_s13  ;;  %p71_p5 = scmp.ne.s32.totalorder %s3271_s13, %s3267_s12 }
  0x3f   : > { %p47_p9 = scmp.ge.s32.totalorder %s4408_s30, 2  ;;  %p285_p10 = scmp.eq.s32.totalorder %s2278_s28, 7 }
  0x40   : > { %p3538_p11 = por %p66_p8, %p65_p3  ;;  %p3544_p6 = por %p72_p1, %p71_p5 }
  0x41   : > { %s4410_s30 = smov (%p47_p9, %s4408_s30), 0  ;;  %s4350_s9 = sadd.s32 1, %s3299_s20 }
  0x42   : > { %s4347_s10 = scalar_select %p3544_p6, 1, 0 }
  0x43   : > { %4349 = sst [smem:[#allocation34_spill]] %s4410_s30  ;;  %s4412_s9 = smov (!%p47_p9, %s4350_s9), %s3299_s20 }
  0x44   : > { %4348 = sst [smem:[#allocation33_spill]] %s4347_s10  ;;  %s54_s0 = ssub.s32 %s3295_s19, %s4410_s30 }
  0x45   : > { %p3557_p7 = por %p279_p2, %p65_p3  ;;  %p51_p8 = scmp.ge.s32.totalorder %s4412_s9, 2 }
  0x46   : > { %p3561_p0 = por %p285_p10, %p71_p5  ;;  %s356_s26 = sand.u32 1, %s3275_s14  }
  0x47   : > { %s4351_s15 = scalar_select %p3557_p7, 1, 0 }
  0x48   : > { %s4353_s16 = scalar_select %p3561_p0, 1, 0 }
  0x49   : > { %4352 = sst [smem:[#allocation35_spill]] %s4351_s15  ;;  %s2285_s24 = sshll.u32 %s3295_s19, 4 }
  0x4a   : > { %4354 = sst [smem:[#allocation36_spill]] %s4353_s16  ;;  %s4414_s9 = smov (%p51_p8, %s4412_s9), 0 }
  0x4b   : > { %4355 = sst [smem:[#allocation37_spill]] %s4414_s9  ;;  %s2284_s25 = sshll.u32 %s356_s26, 6 }
  0x4c   : > { %s53_s28 = ssub.s32 %s3299_s20, %s4414_s9  ;;  %s4356_s3 = ssub.s32 %s3291_s18, %s4406_s27 }
  0x4d   : > { %s55_s2 = sor.u32 %s54_s0, %s53_s28  ;;  %s83_s17 = sor.u32 %s4356_s3, %s53_s28 }
  0x4e   : > { %p56_p2 = scmp.eq.s32.totalorder %s55_s2, 0  ;;  %p84_p3 = scmp.eq.s32.totalorder %s83_s17, 0 }
  0x4f   : > { %s4357_s1 = sshll.u32 %s3299_s20, 5  ;;  %s360_s5 = scalar_lea.vmem [#allocation6], %s2284_s25 }
  0x50   : > { %s365_s4 = sadd.s32 %s4357_s1, %s2285_s24  ;;  %s370_s30 = sshll.u32 %s360_s5, 4  ;;  %s371_s30 = int_to_ptr.vmem [resolvable:$true] %s370_s30 }
  0x51   : > { %s3577_s12 = scalar_select %p56_p2, %s3275_s14, %s58_s23  }
  0x52   : > { %s4358_s16 = sadd.s32 1, %s3263_s11  ;;  %s2287_s15 = sshll.u32 %s365_s4, 2 }
  0x53   : > { %s3582_s19 = scalar_select %p84_p3, %s3263_s11, %s4358_s16  }
  0x54   : > { %s4359_s9 = sld [smem:[#allocation38_spill]]  ;;  %p2726_p5 = pnand %p2742_p12, %p3538_p11 }
  0x55   : > { %s2295_s2 = sshll.u32 %s365_s4, 3  ;;  %s357_s1 = scalar_lea.sflag [#allocation7], %s356_s26 }
  0x56   : > { %s4360_s23 = sld [smem:[#allocation40_spill]]  ;;  %s2292_s24 = sshll.u32 %s356_s26, 7 }
  0x57   : > { %s408_s22 = scalar_lea.vmem [#allocation11], %s2292_s24  ;;  %s4361_s29 = smov 8  }
  0x58   : > { %s418_s10 = sshll.u32 %s408_s22, 4  ;;  %s419_s10 = int_to_ptr.vmem [resolvable:$true] %s418_s10 }
  0x5a   : > { %s367_s0 = scalar_lea.hbm %s4359_s9, %s2287_s15  ;;  %s4362_s9 = smov 128  }
  0x5b   : > { %s368_s17 = sshll.u32 %s367_s0, 4  ;;  %430 = sbr.rel (%p3443_p4) target bundleno = 1846 (0x736), region = 56  ;;  %s369_s17 = int_to_ptr.hbm [resolvable:$true] %s368_s17 }
  0x5c   : > { %2728 = dma.hbm_to_vmem [thread:$0]  (!%p2726_p5), %s369_s17, 1024, %s371_s30, %s357_s1, %s4344_s7, %s4344_s7, %s4343_s6  }
  0x5d   : > { %s415_s16 = scalar_lea.hbm %s4360_s23, %s2295_s2  ;;  %s3604_s6 = sand.u32 (!%p3443_p4), 1, %s3271_s13  }
  0x5e   : > { %s416_s25 = sshll.u32 %s415_s16, 4  ;;  %s2297_s7 = sshll.u32 (!%p3443_p4), %s3604_s6, 6  ;;  %s417_s25 = int_to_ptr.hbm [resolvable:$true] %s416_s25 }
  0x5f   : > { %2734 = dma.hbm_to_vmem [thread:$0]  (!%p2726_p5), %s417_s25, 2048, %s419_s10, %s3507_s8, %s4362_s9, %s4362_s9, %s4361_s29  }
  0x60   : > { %s433_s30 = scalar_lea.sflag [#allocation7], %s3604_s6  ;;  %s3608_s26 = scalar_lea.vmem [#allocation6], %s2297_s7 }
  0x61   : > { %3230 = dma.done.wait (%p3544_p6), %s433_s30, 1024  }
  0x62   : > { %3232 = vsyncadd (%p3544_p6), %s433_s30, 4294966272  ;;  %s4365_s28 = sld [smem:[#allocation30_spill]] }
  0x63   : > { %s4366_s8 = sld [smem:[#allocation24_spill]] }
  0x68   : > { %s442_s17 = sand.u32 1, %s4365_s28  }
  0x69   : > { %s444_s2 = sand.u32 1, %s4366_s8   ;;  %s443_s5 = scalar_lea.sflag [#allocation10], %s442_s17 }
  0x6a   : > { %s2298_s1 = sshll.u32 %s444_s2, 6 }
  0x6b   : > { %s3616_s3 = scalar_lea.vmem [#allocation9], %s2298_s1 }
  0x6c   : > { %3234 = dma.done.wait (%p3487_p13), %s443_s5, 1024  }
  0x6d   : > { %3236 = vsyncadd (%p3487_p13), %s443_s5, 4294966272  ;;  %s2299_s23 = sshll.u32 %s3604_s6, 7 }
  0x6e   : > { %s3623_s16 = scalar_lea.vmem [#allocation11], %s2299_s23 }
  0x6f   : > { %3238 = dma.done.wait (%p3544_p6), %s443_s5, 2048  }
  0x70   : > { %3240 = vsyncadd (%p3544_p6), %s443_s5, 4294965248 }
  0x71   : > { %3242 = dma.done.wait (%p72_p1), [#allocation13], 3072  }
  0x72   : > { %3244 = vsyncadd (%p72_p1), [#allocation13], 4294964224 }
  0x73   : > { %3246 = dma.done.wait (%p72_p1), [#allocation16], 1024  }
  0x74   : > { %3248 = vsyncadd (%p72_p1), [#allocation16], 4294966272  ;;  %s3637_s24 = scalar_lea.vmem [#allocation17], %s2299_s23  ;;  %s4368_s25 = sld [smem:[#allocation26_spill]] }
  0x7a   : > { %p2304_p4 = scmp.ne.s32.totalorder %s4368_s25, 0 }
  0x7b   : > { %s4369_s29 = sld [smem:[#allocation44_spill]] (!%p2304_p4) }
  0x7c   : > { %524 = sbr.rel (%p2304_p4) target bundleno = 324 (0x144), region = 84 }
  0x81   : > { %v2551_v0 = vld [vmem:[#allocation12 + $0x38] sm:$0xff]  ;;  %v2550_v1 = vld [vmem:[#allocation12 + $0x30] sm:$0xff]  ;;  %v2549_v2 = vld [vmem:[#allocation12 + $0x28] sm:$0xff]  ;;  %vm738_vm0 = vcmask 7168   ;;  %v3312_v19 = vmov -inf   ;;  %v3313_v48 = vmov 0.0  }
  0x82   : > { %657 = vmatpush.bf16.msra.mxu0 %v2551_v0  ;;  %2639 = vmatpush.bf16.msra.mxu1 %v2551_v0  ;;  %v2548_v3 = vld [vmem:[#allocation12 + $0x20] sm:$0xff]  ;;  %v2547_v4 = vld [vmem:[#allocation12 + $0x18] sm:$0xff]  ;;  %v2546_v5 = vld [vmem:[#allocation12 + $0x10] sm:$0xff]  ;;  %739 = vst.msk [vmem:[#allocation3] sm:$0xff] %vm738_vm0, %v3312_v19 }
  0x83   : > { %2640 = vmatpush.bf16.msra.mxu2 %v2551_v0  ;;  %2641 = vmatpush.bf16.msra.mxu3 %v2551_v0  ;;  %v2545_v6 = vld [vmem:[#allocation12 + $0x8] sm:$0xff]  ;;  %v2544_v7 = vld [vmem:[#allocation12] sm:$0xff]  ;;  %v2538_v9 = vld [vmem:[%s3608_s26 + $0x10] sm:$0xff]  ;;  %740 = vst.msk [vmem:[#allocation3 + $0x8] sm:$0xff] %vm738_vm0, %v3312_v19 }
  0x84   : > { %v2536_v8 = vld [vmem:[%s3608_s26] sm:$0xff]  ;;  %v2542_v11 = vld [vmem:[%s3608_s26 + $0x30] sm:$0xff]  ;;  %v2537_v12 = vld [vmem:[%s3608_s26 + $0x8] sm:$0xff]  ;;  %741 = vst.msk [vmem:[#allocation3 + $0x10] sm:$0xff] %vm738_vm0, %v3312_v19 }
  0x85   : > { %v2540_v10 = vld [vmem:[%s3608_s26 + $0x20] sm:$0xff]  ;;  %v2539_v13 = vld [vmem:[%s3608_s26 + $0x18] sm:$0xff]  ;;  %v2541_v14 = vld [vmem:[%s3608_s26 + $0x28] sm:$0xff]  ;;  %742 = vst.msk [vmem:[#allocation3 + $0x18] sm:$0xff] %vm738_vm0, %v3312_v19 }
  0x86   : > { %658 = vmatpush.bf16.msra.mxu0 %v2550_v1  ;;  %2642 = vmatpush.bf16.msra.mxu1 %v2550_v1  ;;  %v2543_v15 = vld [vmem:[%s3608_s26 + $0x38] sm:$0xff]  ;;  %v3651_v18 = vld [vmem:[%s4369_s29] ss:$0 sm:$0xff]  ;;  %743 = vst.msk [vmem:[#allocation3 + $0x20] sm:$0xff] %vm738_vm0, %v3312_v19 }
  0x87   : > { %2643 = vmatpush.bf16.msra.mxu2 %v2550_v1  ;;  %2644 = vmatpush.bf16.msra.mxu3 %v2550_v1  ;;  %744 = vst.msk [vmem:[#allocation3 + $0x28] sm:$0xff] %vm738_vm0, %v3312_v19 }
  0x88   : > { %745 = vst.msk [vmem:[#allocation3 + $0x30] sm:$0xff] %vm738_vm0, %v3312_v19 }
  0x89   : > { %746 = vst.msk [vmem:[#allocation3 + $0x38] sm:$0xff] %vm738_vm0, %v3312_v19 }
  0x8a   : > { %659 = vmatpush.bf16.msra.mxu0 %v2549_v2  ;;  %2645 = vmatpush.bf16.msra.mxu1 %v2549_v2  ;;  %747 = vst.msk [vmem:[#allocation3 + $0x40] sm:$0xff] %vm738_vm0, %v3312_v19 }
  0x8b   : > { %2646 = vmatpush.bf16.msra.mxu2 %v2549_v2  ;;  %2647 = vmatpush.bf16.msra.mxu3 %v2549_v2  ;;  %748 = vst.msk [vmem:[#allocation3 + $0x48] sm:$0xff] %vm738_vm0, %v3312_v19 }
  0x8c   : > { %749 = vst.msk [vmem:[#allocation3 + $0x50] sm:$0xff] %vm738_vm0, %v3312_v19 }
  0x8d   : > { %750 = vst.msk [vmem:[#allocation3 + $0x58] sm:$0xff] %vm738_vm0, %v3312_v19 }
  0x8e   : > { %660 = vmatpush.bf16.msra.mxu0 %v2548_v3  ;;  %2648 = vmatpush.bf16.msra.mxu1 %v2548_v3  ;;  %751 = vst.msk [vmem:[#allocation3 + $0x60] sm:$0xff] %vm738_vm0, %v3312_v19 }
  0x8f   : > { %2649 = vmatpush.bf16.msra.mxu2 %v2548_v3  ;;  %2650 = vmatpush.bf16.msra.mxu3 %v2548_v3  ;;  %752 = vst.msk [vmem:[#allocation3 + $0x68] sm:$0xff] %vm738_vm0, %v3312_v19 }
  0x90   : > { %753 = vst.msk [vmem:[#allocation3 + $0x70] sm:$0xff] %vm738_vm0, %v3312_v19 }
  0x91   : > { %754 = vst.msk [vmem:[#allocation3 + $0x78] sm:$0xff] %vm738_vm0, %v3312_v19 }
  0x92   : > { %661 = vmatpush.bf16.msra.mxu0 %v2547_v4  ;;  %2651 = vmatpush.bf16.msra.mxu1 %v2547_v4  ;;  %755 = vst.msk [vmem:[#allocation4] sm:$0xff] %vm738_vm0, %v3313_v48 }
  0x93   : > { %2652 = vmatpush.bf16.msra.mxu2 %v2547_v4  ;;  %2653 = vmatpush.bf16.msra.mxu3 %v2547_v4  ;;  %756 = vst.msk [vmem:[#allocation4 + $0x8] sm:$0xff] %vm738_vm0, %v3313_v48 }
  0x94   : > { %757 = vst.msk [vmem:[#allocation4 + $0x10] sm:$0xff] %vm738_vm0, %v3313_v48 }
  0x95   : > { %758 = vst.msk [vmem:[#allocation4 + $0x18] sm:$0xff] %vm738_vm0, %v3313_v48 }
  0x96   : > { %662 = vmatpush.bf16.msra.mxu0 %v2546_v5  ;;  %2654 = vmatpush.bf16.msra.mxu1 %v2546_v5  ;;  %759 = vst.msk [vmem:[#allocation4 + $0x20] sm:$0xff] %vm738_vm0, %v3313_v48 }
  0x97   : > { %2655 = vmatpush.bf16.msra.mxu2 %v2546_v5  ;;  %2656 = vmatpush.bf16.msra.mxu3 %v2546_v5  ;;  %760 = vst.msk [vmem:[#allocation4 + $0x28] sm:$0xff] %vm738_vm0, %v3313_v48 }
  0x98   : > { %761 = vst.msk [vmem:[#allocation4 + $0x30] sm:$0xff] %vm738_vm0, %v3313_v48 }
  0x99   : > { %762 = vst.msk [vmem:[#allocation4 + $0x38] sm:$0xff] %vm738_vm0, %v3313_v48 }
  0x9a   : > { %663 = vmatpush.bf16.msra.mxu0 %v2545_v6  ;;  %2657 = vmatpush.bf16.msra.mxu1 %v2545_v6  ;;  %763 = vst.msk [vmem:[#allocation4 + $0x40] sm:$0xff] %vm738_vm0, %v3313_v48 }
  0x9b   : > { %2658 = vmatpush.bf16.msra.mxu2 %v2545_v6  ;;  %2659 = vmatpush.bf16.msra.mxu3 %v2545_v6  ;;  %764 = vst.msk [vmem:[#allocation4 + $0x48] sm:$0xff] %vm738_vm0, %v3313_v48 }
  0x9c   : > { %765 = vst.msk [vmem:[#allocation4 + $0x50] sm:$0xff] %vm738_vm0, %v3313_v48 }
  0x9d   : > { %766 = vst.msk [vmem:[#allocation4 + $0x58] sm:$0xff] %vm738_vm0, %v3313_v48 }
  0x9e   : > { %664 = vmatpush.bf16.msra.mxu0 %v2544_v7  ;;  %2660 = vmatpush.bf16.msra.mxu1 %v2544_v7  ;;  %767 = vst.msk [vmem:[#allocation4 + $0x60] sm:$0xff] %vm738_vm0, %v3313_v48 }
  0x9f   : > { %2661 = vmatpush.bf16.msra.mxu2 %v2544_v7  ;;  %2662 = vmatpush.bf16.msra.mxu3 %v2544_v7  ;;  %768 = vst.msk [vmem:[#allocation4 + $0x68] sm:$0xff] %vm738_vm0, %v3313_v48 }
  0xa0   : > { %769 = vst.msk [vmem:[#allocation4 + $0x70] sm:$0xff] %vm738_vm0, %v3313_v48 }
  0xa1   : > { %665 = vmatmul.bf16.vlgmr.msra.gmra.mxu0 %v2536_v8  ;;  %675 = vmatmul.bf16.vlgmr.msra.gmra.mxu1 %v2538_v9  ;;  %770 = vst.msk [vmem:[#allocation4 + $0x78] sm:$0xff] %vm738_vm0, %v3313_v48 }
  0xa2   : > { %685 = vmatmul.bf16.vlgmr.msra.gmra.mxu2 %v2540_v10  ;;  %695 = vmatmul.bf16.vlgmr.msra.gmra.mxu3 %v2542_v11  ;;  %771 = vst [vmem:[#allocation5] sm:$0xff] %v3313_v48 }
  0xa3   : > { %772 = vst [vmem:[#allocation5 + $0x18] sm:$0xff] %v3313_v48 }
  0xa4   : > { %773 = vst [vmem:[#allocation5 + $0x50] sm:$0xff] %v3313_v48 }
  0xa5   : > { %774 = vst [vmem:[#allocation5 + $0x60] sm:$0xff] %v3313_v48 }
  0xa6   : > { %775 = vst [vmem:[#allocation5 + $0x68] sm:$0xff] %v3313_v48 }
  0xa7   : > { %776 = vst [vmem:[#allocation5 + $0x20] sm:$0xff] %v3313_v48 }
  0xa8   : > { %777 = vst [vmem:[#allocation5 + $0x70] sm:$0xff] %v3313_v48 }
  0xa9   : > { %778 = vst [vmem:[#allocation5 + $0x10] sm:$0xff] %v3313_v48 }
  0xaa   : > { %779 = vst [vmem:[#allocation5 + $0x28] sm:$0xff] %v3313_v48 }
  0xab   : > { %780 = vst [vmem:[#allocation5 + $0x40] sm:$0xff] %v3313_v48 }
  0xac   : > { %781 = vst [vmem:[#allocation5 + $0x38] sm:$0xff] %v3313_v48 }
  0xad   : > { %782 = vst [vmem:[#allocation5 + $0x8] sm:$0xff] %v3313_v48 }
  0xae   : > { %783 = vst [vmem:[#allocation5 + $0x58] sm:$0xff] %v3313_v48 }
  0xaf   : > { %784 = vst [vmem:[#allocation5 + $0x48] sm:$0xff] %v3313_v48 }
  0xb0   : > { %785 = vst [vmem:[#allocation5 + $0x78] sm:$0xff] %v3313_v48 }
  0xb1   : > { %670 = vmatmul.bf16.gmra.mxu0 %v2537_v12  ;;  %680 = vmatmul.bf16.gmra.mxu1 %v2539_v13  ;;  %786 = vst [vmem:[#allocation5 + $0x30] sm:$0xff] %v3313_v48 }
  0xb2   : > { %690 = vmatmul.bf16.gmra.mxu2 %v2541_v14  ;;  %700 = vmatmul.bf16.gmra.mxu3 %v2543_v15 }
 0x11e   : > { %v666_v16 = vpop.f32.mrf.mxu0  ;;  %v676_v17 = vpop.f32.mrf.mxu1 }
 0x11f   : > { %v667_v24 = vadd.f32 %v3651_v18, %v666_v16  ;;  %v677_v25 = vadd.f32 %v3651_v18, %v676_v17 }
 0x125   : > { %v686_v20 = vpop.f32.mrf.mxu2  ;;  %v696_v21 = vpop.f32.mrf.mxu3 }
 0x126   : > { %v668_v22 = vpop.f32.mrf.mxu0  ;;  %v678_v23 = vpop.f32.mrf.mxu1  ;;  %v687_v32 = vadd.f32 %v3651_v18, %v686_v20  ;;  %v697_v33 = vadd.f32 %v3651_v18, %v696_v21 }
 0x127   : > { %v669_v26 = vadd.f32 %v3651_v18, %v668_v22  ;;  %v679_v27 = vadd.f32 %v3651_v18, %v678_v23 }
 0x129   : > { %v2595_v28 = vpack.c.bf16 %v669_v26, %v667_v24  ;;  %v2605_v29 = vpack.c.bf16 %v679_v27, %v677_v25 }
 0x12b   : > { %2596 = vst [vmem:[#allocation2 + $0x30] sm:$0xff] %v2595_v28  }
 0x12c   : > { %2633 = vst [vmem:[#allocation2 + $0x18] sm:$0xff] %v2605_v29  }
 0x12d   : > { %v688_v30 = vpop.f32.mrf.mxu2  ;;  %v698_v31 = vpop.f32.mrf.mxu3 }
 0x12e   : > { %v689_v34 = vadd.f32 %v3651_v18, %v688_v30  ;;  %v699_v35 = vadd.f32 %v3651_v18, %v698_v31  ;;  %v671_v36 = vpop.f32.mrf.mxu0  ;;  %v681_v37 = vpop.f32.mrf.mxu1 }
 0x12f   : > { %v672_v44 = vadd.f32 %v3651_v18, %v671_v36  ;;  %v682_v45 = vadd.f32 %v3651_v18, %v681_v37 }
 0x130   : > { %v2615_v38 = vpack.c.bf16 %v689_v34, %v687_v32  ;;  %v2625_v39 = vpack.c.bf16 %v699_v35, %v697_v33 }
 0x132   : > { %2635 = vst [vmem:[#allocation2 + $0x8] sm:$0xff] %v2615_v38  }
 0x133   : > { %2637 = vst [vmem:[#allocation2 + $0x28] sm:$0xff] %v2625_v39  }
 0x135   : > { %v691_v40 = vpop.f32.mrf.mxu2  ;;  %v701_v41 = vpop.f32.mrf.mxu3 }
 0x136   : > { %v673_v42 = vpop.f32.mrf.mxu0  ;;  %v683_v43 = vpop.f32.mrf.mxu1  ;;  %v692_v53 = vadd.f32 %v3651_v18, %v691_v40  ;;  %v702_v54 = vadd.f32 %v3651_v18, %v701_v41 }
 0x137   : > { %v674_v46 = vadd.f32 %v3651_v18, %v673_v42  ;;  %v684_v47 = vadd.f32 %v3651_v18, %v683_v43 }
 0x139   : > { %v2600_v49 = vpack.c.bf16 %v674_v46, %v672_v44  ;;  %v2610_v50 = vpack.c.bf16 %v684_v47, %v682_v45 }
 0x13b   : > { %2632 = vst [vmem:[#allocation2] sm:$0xff] %v2600_v49  }
 0x13c   : > { %2634 = vst [vmem:[#allocation2 + $0x10] sm:$0xff] %v2610_v50  }
 0x13d   : > { %v693_v51 = vpop.f32.mrf.mxu2  ;;  %v703_v52 = vpop.f32.mrf.mxu3 }
 0x13e   : > { %v694_v55 = vadd.f32 %v3651_v18, %v693_v51  ;;  %v704_v56 = vadd.f32 %v3651_v18, %v703_v52 }
 0x140   : > { %v2620_v57 = vpack.c.bf16 %v694_v55, %v692_v53  ;;  %v2630_v58 = vpack.c.bf16 %v704_v56, %v702_v54 }
 0x142   : > { %2636 = vst [vmem:[#allocation2 + $0x20] sm:$0xff] %v2620_v57  }
 0x143   : > { %2638 = vst [vmem:[#allocation2 + $0x38] sm:$0xff] %v2630_v58  }
 0x144 PF: > { %v2459_v59 = vld [vmem:[#allocation14 + $0x70] sm:$0xf]  ;;  %v2575_v60 = vld [vmem:[#allocation14 + $0x74] sm:$0xf0]  ;;  %v2451_v61 = vld [vmem:[#allocation14 + $0x60] sm:$0xf] }
 0x145   : > { %v2460_v62 = vor.u32 %v2575_v60, %v2459_v59  ;;  %v2573_v63 = vld [vmem:[#allocation14 + $0x64] sm:$0xf0]  ;;  %v2443_v1 = vld [vmem:[#allocation14 + $0x50] sm:$0xf]  ;;  %v2571_v2 = vld [vmem:[#allocation14 + $0x54] sm:$0xf0] }
 0x146   : > { %v2452_v0 = vor.u32 %v2573_v63, %v2451_v61  ;;  %v2444_v3 = vor.u32 %v2571_v2, %v2443_v1  ;;  %v2435_v4 = vld [vmem:[#allocation14 + $0x40] sm:$0xf]  ;;  %v2569_v5 = vld [vmem:[#allocation14 + $0x44] sm:$0xf0]  ;;  %v2427_v7 = vld [vmem:[#allocation14 + $0x30] sm:$0xf] }
 0x147   : > { %947 = vmatpush.bf16.msra.mxu0 %v2460_v62  ;;  %v2436_v6 = vor.u32 %v2569_v5, %v2435_v4  ;;  %v2567_v8 = vld [vmem:[#allocation14 + $0x34] sm:$0xf0]  ;;  %v2419_v10 = vld [vmem:[#allocation14 + $0x20] sm:$0xf]  ;;  %v2565_v11 = vld [vmem:[#allocation14 + $0x24] sm:$0xf0] }
 0x148   : > { %v2428_v9 = vor.u32 %v2567_v8, %v2427_v7  ;;  %v2420_v12 = vor.u32 %v2565_v11, %v2419_v10  ;;  %v2411_v13 = vld [vmem:[#allocation14 + $0x10] sm:$0xf]  ;;  %v2563_v14 = vld [vmem:[#allocation14 + $0x14] sm:$0xf0]  ;;  %v2403_v16 = vld [vmem:[#allocation14] sm:$0xf] }
 0x149   : > { %v2412_v15 = vor.u32 %v2563_v14, %v2411_v13  ;;  %v2561_v17 = vld [vmem:[#allocation14 + $0x4] sm:$0xf0]  ;;  %v3702_v19 = vld [vmem:[%s3616_s3] sm:$0xff]  ;;  %v3710_v21 = vld [vmem:[%s3616_s3 + $0x10] sm:$0xff]  ;;  %vm1530_vm1 = vcmask 7168   ;;  %s4370_s15 = sld [smem:[#allocation45_spill]] }
 0x14a   : > { %v2404_v18 = vor.u32 %v2561_v17, %v2403_v16  ;;  %v3706_v20 = vld [vmem:[%s3616_s3 + $0x8] sm:$0xff]  ;;  %v3714_v22 = vld [vmem:[%s3616_s3 + $0x18] sm:$0xff]  ;;  %v3718_v23 = vld [vmem:[%s3616_s3 + $0x20] sm:$0xff]  ;;  %s4380_s7 = sld [smem:[#allocation26_spill]] }
 0x14b   : > { %948 = vmatpush.bf16.msra.mxu0 %v2452_v0  ;;  %v3722_v24 = vld [vmem:[%s3616_s3 + $0x28] sm:$0xff]  ;;  %v3726_v25 = vld [vmem:[%s3616_s3 + $0x30] sm:$0xff]  ;;  %v3730_v26 = vld [vmem:[%s3616_s3 + $0x38] sm:$0xff] }
 0x14c   : > { %v2576_v51 = vld [vmem:[#allocation2 + $0x30] sm:$0xff]  ;;  %v2577_v52 = vld [vmem:[#allocation2] sm:$0xff]  ;;  %v2578_v53 = vld [vmem:[#allocation2 + $0x18] sm:$0xff] }
 0x14d   : > { %v2579_v54 = vld [vmem:[#allocation2 + $0x10] sm:$0xff]  ;;  %v2461_v56 = vld [vmem:[#allocation14 + $0x78] sm:$0xf0]  ;;  %v2572_v57 = vld [vmem:[#allocation14 + $0x64] sm:$0xf] }
 0x14e   : > { %v2574_v55 = vld [vmem:[#allocation14 + $0x74] sm:$0xf]  ;;  %v2453_v59 = vld [vmem:[#allocation14 + $0x68] sm:$0xf0]  ;;  %v2445_v62 = vld [vmem:[#allocation14 + $0x58] sm:$0xf0] }
 0x14f   : > { %949 = vmatpush.bf16.msra.mxu0 %v2444_v3  ;;  %v2464_v58 = vor.u32 %v2574_v55, %v2461_v56  ;;  %v2456_v60 = vor.u32 %v2572_v57, %v2453_v59  ;;  %v2570_v61 = vld [vmem:[#allocation14 + $0x54] sm:$0xf]  ;;  %v2568_v0 = vld [vmem:[#allocation14 + $0x44] sm:$0xf]  ;;  %v2437_v1 = vld [vmem:[#allocation14 + $0x48] sm:$0xf0] }
 0x150   : > { %v2448_v63 = vor.u32 %v2570_v61, %v2445_v62  ;;  %v2440_v2 = vor.u32 %v2568_v0, %v2437_v1  ;;  %v2580_v3 = vld [vmem:[#allocation2 + $0x8] sm:$0xff]  ;;  %v2566_v4 = vld [vmem:[#allocation14 + $0x34] sm:$0xf]  ;;  %v2429_v5 = vld [vmem:[#allocation14 + $0x38] sm:$0xf0]  ;;  %p2497_p1 = scmp.ne.s32.totalorder %s4380_s7, 1 }
 0x151   : > { %996 = vmatpush.bf16.msra.mxu1 %v2464_v58  ;;  %v2432_v7 = vor.u32 %v2566_v4, %v2429_v5  ;;  %v2421_v8 = vld [vmem:[#allocation14 + $0x28] sm:$0xf0]  ;;  %v2562_v10 = vld [vmem:[#allocation14 + $0x14] sm:$0xf]  ;;  %v2413_v11 = vld [vmem:[#allocation14 + $0x18] sm:$0xf0] }
 0x152   : > { %v2560_v13 = vld [vmem:[#allocation14 + $0x4] sm:$0xf]  ;;  %v2405_v14 = vld [vmem:[#allocation14 + $0x8] sm:$0xf0]  ;;  %v3803_v55 = vld [vmem:[#allocation3 + $0x10] sm:$0xff]  ;;  %s4381_s28 = sld [smem:[#allocation46_spill]] (!%p2497_p1) }
 0x153   : > { %950 = vmatpush.bf16.msra.mxu0 %v2436_v6  ;;  %v2564_v6 = vld [vmem:[#allocation14 + $0x24] sm:$0xf]  ;;  %v2582_v17 = vld [vmem:[#allocation2 + $0x28] sm:$0xff]  ;;  %v3825_v0 = vld [vmem:[#allocation3 + $0x18] sm:$0xff] }
 0x154   : > { %v2581_v16 = vld [vmem:[#allocation2 + $0x20] sm:$0xff]  ;;  %v3805_v57 = vld [vmem:[#allocation3 + $0x8] sm:$0xff]  ;;  %v2583_v4 = vld [vmem:[#allocation2 + $0x38] sm:$0xff] }
 0x155   : > { %997 = vmatpush.bf16.msra.mxu1 %v2456_v60 }
 0x157   : > { %951 = vmatpush.bf16.msra.mxu0 %v2428_v9  ;;  %v2424_v9 = vor.u32 %v2564_v6, %v2421_v8  ;;  %v3835_v6 = vld [vmem:[#allocation3 + $0x20] sm:$0xff] }
 0x159   : > { %998 = vmatpush.bf16.msra.mxu1 %v2448_v63 }
 0x15b   : > { %952 = vmatpush.bf16.msra.mxu0 %v2420_v12  ;;  %v2416_v12 = vor.u32 %v2562_v10, %v2413_v11  ;;  %v3845_v11 = vld [vmem:[#allocation3 + $0x28] sm:$0xff] }
 0x15d   : > { %999 = vmatpush.bf16.msra.mxu1 %v2440_v2 }
 0x15f   : > { %953 = vmatpush.bf16.msra.mxu0 %v2412_v15  ;;  %v2408_v15 = vor.u32 %v2560_v13, %v2405_v14 }
 0x161   : > { %1000 = vmatpush.bf16.msra.mxu1 %v2432_v7 }
 0x163   : > { %954 = vmatpush.bf16.msra.mxu0 %v2404_v18 }
 0x165   : > { %1001 = vmatpush.bf16.msra.mxu1 %v2424_v9 }
 0x166   : > { %955 = vmatmul.bf16.vlgmr.msra.gmra.mxu0 %v3702_v19 }
 0x169   : > { %1002 = vmatpush.bf16.msra.mxu1 %v2416_v12 }
 0x16d   : > { %1003 = vmatpush.bf16.msra.mxu1 %v2408_v15  ;;  %v3901_v15 = vld [vmem:[#allocation3 + $0x60] sm:$0xff] }
 0x170   : > { %1004 = vmatmul.bf16.vlgmr.msra.gmra.mxu1 %v3702_v19 }
 0x176   : > { %960 = vmatmul.bf16.gmra.mxu0 %v3706_v20 }
 0x180   : > { %1009 = vmatmul.bf16.gmra.mxu1 %v3706_v20 }
 0x186   : > { %965 = vmatmul.bf16.gmra.mxu0 %v3710_v21 }
 0x190   : > { %1014 = vmatmul.bf16.gmra.mxu1 %v3710_v21 }
 0x196   : > { %970 = vmatmul.bf16.gmra.mxu0 %v3714_v22 }
 0x1a0   : > { %1019 = vmatmul.bf16.gmra.mxu1 %v3714_v22 }
 0x1a6   : > { %975 = vmatmul.bf16.gmra.mxu0 %v3718_v23 }
 0x1b0   : > { %1024 = vmatmul.bf16.gmra.mxu1 %v3718_v23 }
 0x1b6   : > { %980 = vmatmul.bf16.gmra.mxu0 %v3722_v24 }
 0x1c0   : > { %1029 = vmatmul.bf16.gmra.mxu1 %v3722_v24 }
 0x1c6   : > { %985 = vmatmul.bf16.gmra.mxu0 %v3726_v25 }
 0x1d0   : > { %1034 = vmatmul.bf16.gmra.mxu1 %v3726_v25 }
 0x1d6   : > { %990 = vmatmul.bf16.gmra.mxu0 %v3730_v26 }
 0x1e0   : > { %1039 = vmatmul.bf16.gmra.mxu1 %v3730_v26 }
 0x1e3   : > { %v956_v27 = vpop.f32.mrf.mxu0 }
 0x1eb   : > { %v958_v28 = vpop.f32.mrf.mxu0 }
 0x1ec   : > { %v1045_v29 = vpack.c.bf16 %v958_v28, %v956_v27 }
 0x1ed   : > { %v3770_v25 = vpop.f32.mrf.mxu1 }
 0x1f3   : > { %v961_v30 = vpop.f32.mrf.mxu0 }
 0x1fb   : > { %v963_v31 = vpop.f32.mrf.mxu0 }
 0x1fc   : > { %v1046_v32 = vpack.c.bf16 %v963_v31, %v961_v30 }
 0x203   : > { %v966_v33 = vpop.f32.mrf.mxu0 }
 0x20b   : > { %v968_v34 = vpop.f32.mrf.mxu0 }
 0x20c   : > { %v1047_v35 = vpack.c.bf16 %v968_v34, %v966_v33 }
 0x213   : > { %v971_v36 = vpop.f32.mrf.mxu0 }
 0x21b   : > { %v973_v37 = vpop.f32.mrf.mxu0 }
 0x21c   : > { %v1048_v38 = vpack.c.bf16 %v973_v37, %v971_v36 }
 0x223   : > { %v976_v39 = vpop.f32.mrf.mxu0 }
 0x22b   : > { %v978_v40 = vpop.f32.mrf.mxu0 }
 0x22c   : > { %v1049_v41 = vpack.c.bf16 %v978_v40, %v976_v39 }
 0x233   : > { %v981_v42 = vpop.f32.mrf.mxu0 }
 0x23b   : > { %v983_v43 = vpop.f32.mrf.mxu0 }
 0x23c   : > { %v1050_v50 = vpack.c.bf16 %v983_v43, %v981_v42 }
 0x243   : > { %v986_v44 = vpop.f32.mrf.mxu0 }
 0x24b   : > { %v988_v45 = vpop.f32.mrf.mxu0 }
 0x24c   : > { %v1051_v49 = vpack.c.bf16 %v988_v45, %v986_v44 }
 0x253   : > { %v991_v46 = vpop.f32.mrf.mxu0 }
 0x25b   : > { %v993_v47 = vpop.f32.mrf.mxu0 }
 0x25c   : > { %v1052_v48 = vpack.c.bf16 %v993_v47, %v991_v46  ;;  %v3314_v46 = vmov 0  }
 0x25d   : > { %2865 = vset.pattern.permute.xlu0 %v3314_v46  ;;  %2866 = vset.pattern.permute.xlu2 %v3314_v46 }
 0x25e   : > { %1145 = vmatpush.bf16.xpose.msrb.mxu0 %v1052_v48  ;;  %2663 = vmatpush.bf16.xpose.msra.mxu2 %v1052_v48 }
 0x25f   : > { %2867 = vset.pattern.permute.xlu1 %v3314_v46 }
 0x266   : > { %1146 = vmatpush.bf16.xpose.msrb.mxu0 %v1051_v49  ;;  %2664 = vmatpush.bf16.xpose.msra.mxu2 %v1051_v49 }
 0x26e   : > { %1147 = vmatpush.bf16.xpose.msrb.mxu0 %v1050_v50  ;;  %2665 = vmatpush.bf16.xpose.msra.mxu2 %v1050_v50  ;;  %v3791_v50 = vld [vmem:[#allocation3] sm:$0xff] }
 0x276   : > { %1148 = vmatpush.bf16.xpose.msrb.mxu0 %v1049_v41  ;;  %2666 = vmatpush.bf16.xpose.msra.mxu2 %v1049_v41  ;;  %v3775_v41 = vpop.f32.mrf.mxu1 }
 0x27e   : > { %1149 = vmatpush.bf16.xpose.msrb.mxu0 %v1048_v38  ;;  %2667 = vmatpush.bf16.xpose.msra.mxu2 %v1048_v38  ;;  %v3780_v26 = vpop.f32.mrf.mxu1 }
 0x286   : > { %1150 = vmatpush.bf16.xpose.msrb.mxu0 %v1047_v35  ;;  %2668 = vmatpush.bf16.xpose.msra.mxu2 %v1047_v35  ;;  %v3785_v47 = vpop.f32.mrf.mxu1 }
 0x28e   : > { %1151 = vmatpush.bf16.xpose.msrb.mxu0 %v1046_v32  ;;  %2669 = vmatpush.bf16.xpose.msra.mxu2 %v1046_v32  ;;  %v3787_v48 = vpop.f32.mrf.mxu1 }
 0x296   : > { %1152 = vmatpush.bf16.xpose.msrb.mxu0 %v1045_v29  ;;  %2670 = vmatpush.bf16.xpose.msra.mxu2 %v1045_v29  ;;  %v3789_v49 = vpop.f32.mrf.mxu1 }
 0x29d   : > { %1153 = vmatmul.bf16.vlgmr.msrb.gmra.mxu0 %v2576_v51  ;;  %1158 = vmatmul.bf16.vlgmr.msra.gmra.mxu2 %v2577_v52 }
 0x29e   : > { %v3793_v51 = vpop.f32.mrf.mxu1 }
 0x2a6   : > { %v3810_v59 = vpop.f32.mrf.mxu1 }
 0x2ad   : > { %1163 = vmatmul.bf16.gmra.mxu2 %v2578_v53 }
 0x2bd   : > { %1168 = vmatmul.bf16.gmra.mxu2 %v2579_v54 }
 0x2cd   : > { %1173 = vmatmul.bf16.gmra.mxu2 %v2580_v3  ;;  %v1025_v3 = vpop.f32.mrf.mxu1 }
 0x2d5   : > { %v1027_v9 = vpop.f32.mrf.mxu1 }
 0x2dd   : > { %1178 = vmatmul.bf16.gmra.mxu2 %v2581_v16  ;;  %v1030_v14 = vpop.f32.mrf.mxu1  ;;  %v3855_v16 = vld [vmem:[#allocation3 + $0x30] sm:$0xff] }
 0x2ed   : > { %1183 = vmatmul.bf16.gmra.mxu2 %v2582_v17 }
 0x2fd   : > { %1188 = vmatmul.bf16.gmra.mxu2 %v2583_v4 }
 0x31a   : > { %v1154_v18 = vpop.f32.mrf.mxu0 }
 0x31b   : > { %v3737_v27 = vmul.f32 0.088388346, %v1154_v18 }
 0x31d   : > { %1226 = vmax.xlane.f32.xlu0 %v3737_v27 }
 0x320   : > { %v1159_v28 = vpop.f32.mrf.mxu2 }
 0x321   : > { %v3741_v29 = vmul.f32 0.088388346, %v1159_v28  ;;  %v1032_v28 = vpop.f32.mrf.mxu1 }
 0x322   : > { %v1156_v30 = vpop.f32.mrf.mxu0 }
 0x323   : > { %v3743_v19 = vmul.f32 0.088388346, %v1156_v30  ;;  %1230 = vmax.xlane.f32.xlu1 %v3741_v29 }
 0x325   : > { %1228 = vmax.xlane.f32.xlu0 %v3743_v19 }
 0x328   : > { %v1161_v20 = vpop.f32.mrf.mxu2 }
 0x329   : > { %v3747_v21 = vmul.f32 0.088388346, %v1161_v20 }
 0x32b   : > { %1232 = vmax.xlane.f32.xlu1 %v3747_v21 }
 0x330   : > { %v1164_v22 = vpop.f32.mrf.mxu2 }
 0x331   : > { %v3751_v31 = vmul.f32 0.088388346, %v1164_v22  ;;  %v3867_v22 = vld [vmem:[#allocation3 + $0x38] sm:$0xff] }
 0x333   : > { %1234 = vmax.xlane.f32.xlu2 %v3751_v31 }
 0x338   : > { %v1166_v23 = vpop.f32.mrf.mxu2 }
 0x339   : > { %v3754_v32 = vmul.f32 0.088388346, %v1166_v23 }
 0x33b   : > { %1236 = vmax.xlane.f32.xlu2 %v3754_v32 }
 0x340   : > { %v1169_v33 = vpop.f32.mrf.mxu2 }
 0x341   : > { %v3758_v34 = vmul.f32 0.088388346, %v1169_v33 }
 0x343   : > { %1238 = vmax.xlane.f32.xlu2 %v3758_v34 }
 0x348   : > { %v1171_v35 = vpop.f32.mrf.mxu2 }
 0x349   : > { %v3761_v36 = vmul.f32 0.088388346, %v1171_v35  ;;  %v1035_v35 = vpop.f32.mrf.mxu1 }
 0x34b   : > { %1240 = vmax.xlane.f32.xlu2 %v3761_v36 }
 0x350   : > { %v1174_v24 = vpop.f32.mrf.mxu2 }
 0x351   : > { %v3765_v37 = vmul.f32 0.088388346, %v1174_v24 }
 0x353   : > { %1242 = vmax.xlane.f32.xlu1 %v3765_v37 }
 0x358   : > { %v3768_v38 = vpop.f32.mrf.mxu2 }
 0x359   : > { %v3865_v20 = vmul.f32 0.088388346, %v3768_v38 }
 0x360   : > { %v1179_v39 = vpop.f32.mrf.mxu2 }
 0x361   : > { %v3772_v40 = vmul.f32 0.088388346, %v1179_v39  ;;  %v3878_v39 = vld [vmem:[#allocation3 + $0x40] sm:$0xff] }
 0x363   : > { %1246 = vmax.xlane.f32.xlu2 %v3772_v40 }
 0x368   : > { %v1181_v42 = vpop.f32.mrf.mxu2 }
 0x369   : > { %v3777_v43 = vmul.f32 0.088388346, %v1181_v42 }
 0x36b   : > { %1248 = vmax.xlane.f32.xlu1 %v3777_v43 }
 0x370   : > { %v1184_v44 = vpop.f32.mrf.mxu2 }
 0x371   : > { %v3782_v45 = vmul.f32 0.088388346, %v1184_v44  ;;  %v1037_v44 = vpop.f32.mrf.mxu1 }
 0x373   : > { %1250 = vmax.xlane.f32.xlu2 %v3782_v45 }
 0x390   : > { %v1227_v52 = vpop.xlane.xlu0 %1226 }
 0x391   : > { %v3796_v53 = vmax.f32 %v3791_v50, %v1227_v52  ;;  %v1040_v52 = vpop.f32.mrf.mxu1 }
 0x393   : > { %1748 = vst.msk [vmem:[#allocation3] sm:$0xff] %vm1530_vm1, %v3796_v53  ;;  %1324 = vperm.xlu0 %2865, %v3796_v53  }
 0x396   : > { %v1231_v56 = vpop.xlane.xlu1 %1230 }
 0x397   : > { %v3808_v58 = vmax.f32 %v3803_v55, %v1231_v56  ;;  %v2868_v56 = vld [vmem:[%s4370_s15] ss:$0 sm:$0xff] }
 0x398   : > { %v1229_v60 = vpop.xlane.xlu0 %1228  ;;  %v1071_v4 = vadd.f32 %v2868_v56, %v1040_v52  ;;  %v1067_v24 = vadd.f32 %v2868_v56, %v1030_v14  ;;  %v1068_v46 = vadd.f32 %v2868_v56, %v1032_v28  ;;  %v1065_v52 = vadd.f32 %v2868_v56, %v1025_v3 }
 0x399   : > { %1750 = vst.msk [vmem:[#allocation3 + $0x10] sm:$0xff] %vm1530_vm1, %v3808_v58  ;;  %v3817_v62 = vmax.f32 %v3805_v57, %v1229_v60  ;;  %1334 = vperm.xlu2 %2866, %v3808_v58   ;;  %v3892_v60 = vld [vmem:[#allocation3 + $0x50] sm:$0xff]  ;;  %v1066_v10 = vadd.f32 %v2868_v56, %v1027_v9  ;;  %v1060_v28 = vadd.f32 %v2868_v56, %v3785_v47 }
 0x39b   : > { %v1275_v63 = vsub.f32 %v3805_v57, %v3817_v62  ;;  %1749 = vst.msk [vmem:[#allocation3 + $0x8] sm:$0xff] %vm1530_vm1, %v3817_v62  ;;  %1329 = vperm.xlu1 %2867, %v3817_v62   ;;  %v1077_v30 = vpack.c.bf16 %v1066_v10, %v1065_v52  ;;  %v1059_v10 = vadd.f32 %v2868_v56, %v3780_v26 }
 0x39e   : > { %v1233_v1 = vpop.xlane.xlu1 %1232 }
 0x39f   : > { %v3828_v2 = vmax.f32 %v3825_v0, %v1233_v1 }
 0x3a1   : > { %1751 = vst.msk [vmem:[#allocation3 + $0x18] sm:$0xff] %vm1530_vm1, %v3828_v2 }
 0x3a3   : > { %1339 = vperm.xlu1 %2867, %v3828_v2  }
 0x3a6   : > { %v1235_v7 = vpop.xlane.xlu2 %1234 }
 0x3a7   : > { %v3838_v8 = vmax.f32 %v3835_v6, %v1235_v7 }
 0x3a9   : > { %1752 = vst.msk [vmem:[#allocation3 + $0x20] sm:$0xff] %vm1530_vm1, %v3838_v8  ;;  %1344 = vperm.xlu2 %2866, %v3838_v8   ;;  %v4373_v57 = vsub.f32 %v3835_v6, %v3838_v8 }
 0x3ab   : > { %v1298_v62 = vmul.f32 1.442695, %v4373_v57 }
 0x3ae   : > { %v1237_v12 = vpop.xlane.xlu2 %1236 }
 0x3af   : > { %v3848_v13 = vmax.f32 %v3845_v11, %v1237_v12  ;;  %v1042_v12 = vpop.f32.mrf.mxu1 }
 0x3b1   : > { %1753 = vst.msk [vmem:[#allocation3 + $0x28] sm:$0xff] %vm1530_vm1, %v3848_v13  ;;  %1349 = vperm.xlu2 %2866, %v3848_v13  }
 0x3b6   : > { %v1239_v17 = vpop.xlane.xlu2 %1238 }
 0x3b7   : > { %v3858_v18 = vmax.f32 %v3855_v16, %v1239_v17  ;;  %v1069_v17 = vadd.f32 %v2868_v56, %v1035_v35  ;;  %v1063_v35 = vadd.f32 %v2868_v56, %v3793_v51  ;;  %v1061_v51 = vadd.f32 %v2868_v56, %v3787_v48 }
 0x3b9   : > { %1754 = vst.msk [vmem:[#allocation3 + $0x30] sm:$0xff] %vm1530_vm1, %v3858_v18 }
 0x3bd   : > { %1244 = vmax.xlane.f32.xlu0 %v3865_v20 }
 0x3be   : > { %v1241_v23 = vpop.xlane.xlu2 %1240 }
 0x3bf   : > { %v3871_v33 = vmax.f32 %v3867_v22, %v1241_v23  ;;  %v1070_v23 = vadd.f32 %v2868_v56, %v1037_v44  ;;  %v1064_v44 = vadd.f32 %v2868_v56, %v3810_v59  ;;  %v1062_v59 = vadd.f32 %v2868_v56, %v3789_v49 }
 0x3c1   : > { %1755 = vst.msk [vmem:[#allocation3 + $0x38] sm:$0xff] %vm1530_vm1, %v3871_v33  ;;  %1359 = vperm.xlu1 %2867, %v3871_v33   ;;  %v1079_v61 = vpack.c.bf16 %v1070_v23, %v1069_v17  ;;  %v1076_v9 = vpack.c.bf16 %v1064_v44, %v1063_v35  ;;  %v1186_v17 = vpop.f32.mrf.mxu2  ;;  %v4375_v6 = vsub.f32 %v3867_v22, %v3871_v33 }
 0x3c2   : > { %v3925_v49 = vmul.f32 0.088388346, %v1186_v17  ;;  %v3948_v17 = vld [vmem:[#allocation3 + $0x48] sm:$0xff] }
 0x3c3   : > { %v1304_v8 = vmul.f32 1.442695, %v4375_v6 }
 0x3c6   : > { %v1243_v38 = vpop.xlane.xlu1 %1242 }
 0x3c7   : > { %v3881_v42 = vmax.f32 %v3878_v39, %v1243_v38  ;;  %v1072_v38 = vadd.f32 %v2868_v56, %v1042_v12 }
 0x3c9   : > { %1756 = vst.msk [vmem:[#allocation3 + $0x40] sm:$0xff] %vm1530_vm1, %v3881_v42  ;;  %1364 = vperm.xlu2 %2866, %v3881_v42   ;;  %v1080_v5 = vpack.c.bf16 %v1072_v38, %v1071_v4  ;;  %v1074_v4 = vpack.c.bf16 %v1060_v28, %v1059_v10 }
 0x3cb   : > { %1667 = vmatpush.bf16.msra.mxu3 %v1080_v5  ;;  %v3908_v5 = vld [vmem:[#allocation3 + $0x58] sm:$0xff] }
 0x3cf   : > { %1668 = vmatpush.bf16.msra.mxu3 %v1079_v61 }
 0x3d1   : > { %1354 = vperm.xlu0 %2865, %v3858_v18  }
 0x3d6   : > { %v1247_v1 = vpop.xlane.xlu2 %1246 }
 0x3d7   : > { %v3895_v7 = vmax.f32 %v3892_v60, %v1247_v1  ;;  %v1078_v1 = vpack.c.bf16 %v1068_v46, %v1067_v24  ;;  %v1057_v24 = vadd.f32 %v2868_v56, %v3770_v25  ;;  %v1058_v46 = vadd.f32 %v2868_v56, %v3775_v41 }
 0x3d9   : > { %1758 = vst.msk [vmem:[#allocation3 + $0x50] sm:$0xff] %vm1530_vm1, %v3895_v7  ;;  %1669 = vmatpush.bf16.msra.mxu3 %v1078_v1  ;;  %v1073_v48 = vpack.c.bf16 %v1058_v46, %v1057_v24 }
 0x3dd   : > { %1670 = vmatpush.bf16.msra.mxu3 %v1077_v30  ;;  %v1075_v30 = vpack.c.bf16 %v1062_v59, %v1061_v51 }
 0x3de   : > { %v1249_v14 = vpop.xlane.xlu1 %1248 }
 0x3df   : > { %v3915_v3 = vmax.f32 %v3908_v5, %v1249_v14 }
 0x3e1   : > { %1759 = vst.msk [vmem:[#allocation3 + $0x58] sm:$0xff] %vm1530_vm1, %v3915_v3  ;;  %1671 = vmatpush.bf16.msra.mxu3 %v1076_v9  ;;  %v1189_v9 = vpop.f32.mrf.mxu2 }
 0x3e5   : > { %1672 = vmatpush.bf16.msra.mxu3 %v1075_v30 }
 0x3e6   : > { %v1251_v12 = vpop.xlane.xlu2 %1250 }
 0x3e7   : > { %v3906_v54 = vmax.f32 %v3901_v15, %v1251_v12 }
 0x3e9   : > { %v1286_v61 = vsub.f32 %v3901_v15, %v3906_v54  ;;  %1760 = vst.msk [vmem:[#allocation3 + $0x60] sm:$0xff] %vm1530_vm1, %v3906_v54  ;;  %1673 = vmatpush.bf16.msra.mxu3 %v1074_v4  ;;  %v1191_v46 = vpop.f32.mrf.mxu2 }
 0x3ed   : > { %1674 = vmatpush.bf16.msra.mxu3 %v1073_v48  ;;  %v3950_v48 = vmul.f32 0.088388346, %v1191_v46 }
 0x3f2   : > { %1256 = vmax.xlane.f32.xlu2 %v3950_v48 }
 0x3f3   : > { %v1335_v41 = vpop.permute.xlu2 %1334 }
 0x3fb   : > { %1252 = vmax.xlane.f32.xlu0 %v3925_v49 }
 0x403   : > { %v1345_v12 = vpop.permute.xlu2 %1344 }
 0x404   : > { %v1406_v24 = vsub.f32 %v3751_v31, %v1345_v12 }
 0x405   : > { %v1325_v23 = vpop.permute.xlu0 %1324 }
 0x406   : > { %v1402_v26 = vsub.f32 %v3737_v27, %v1325_v23  ;;  %v1426_v4 = vmul.f32 1.442695, %v1406_v24 }
 0x408   : > { %v1418_v38 = vmul.f32 1.442695, %v1402_v26 }
 0x40a   : > { %2869 = vpow2.f32 %v1418_v38 }
 0x40b   : > { %v1350_v59 = vpop.permute.xlu2 %1349 }
 0x40c   : > { %v1407_v30 = vsub.f32 %v3754_v32, %v1350_v59 }
 0x40d   : > { %v1330_v47 = vpop.permute.xlu1 %1329 }
 0x40e   : > { %v1403_v52 = vsub.f32 %v3743_v19, %v1330_v47  ;;  %v1404_v19 = vsub.f32 %v3741_v29, %v1335_v41  ;;  %v1428_v29 = vmul.f32 1.442695, %v1407_v30 }
 0x40f   : > { %1374 = vperm.xlu0 %2865, %v3895_v7  }
 0x410   : > { %v1420_v25 = vmul.f32 1.442695, %v1403_v52  ;;  %v3931_v1 = vpop.eup %2869  ;;  %v1422_v51 = vmul.f32 1.442695, %v1404_v19 }
 0x412   : > { %2871 = vpow2.f32 %v1420_v25 }
 0x415   : > { %v1340_v56 = vpop.permute.xlu1 %1339 }
 0x416   : > { %v1405_v44 = vsub.f32 %v3747_v21, %v1340_v56 }
 0x417   : > { %1384 = vperm.xlu0 %2865, %v3906_v54  }
 0x418   : > { %v3934_v35 = vpop.eup %2871  ;;  %v1424_v14 = vmul.f32 1.442695, %v1405_v44 }
 0x419   : > { %v1659_v27 = vpack.c.bf16 %v3934_v35, %v3931_v1 }
 0x41a   : > { %2873 = vpow2.f32 %v1424_v14 }
 0x41b   : > { %1675 = vmatmul.bf16.vlgmr.msra.gmra.mxu3 %v1659_v27  ;;  %2875 = vpow2.f32 %v1422_v51  ;;  %v3975_v51 = vmul.f32 0.088388346, %v1189_v9  ;;  %v4372_v9 = vsub.f32 %v3845_v11, %v3848_v13  ;;  %v1285_v13 = vsub.f32 %v3908_v5, %v3915_v3 }
 0x41c   : > { %2877 = vpow2.f32 %v1428_v29 }
 0x41d   : > { %2879 = vpow2.f32 %v1426_v4  ;;  %v1300_v29 = vmul.f32 1.442695, %v4372_v9 }
 0x420   : > { %v3940_v10 = vpop.eup %2873 }
 0x421   : > { %v3942_v28 = vpop.eup %2875 }
 0x422   : > { %v1660_v21 = vpack.c.bf16 %v3940_v10, %v3942_v28  ;;  %v3961_v31 = vpop.eup %2877 }
 0x423   : > { %v3963_v38 = vpop.eup %2879 }
 0x424   : > { %v1661_v47 = vpack.c.bf16 %v3961_v31, %v3963_v38 }
 0x42b   : > { %1680 = vmatmul.bf16.gmra.mxu3 %v1660_v21  ;;  %v4371_v21 = vsub.f32 %v3791_v50, %v3796_v53  ;;  %v4374_v50 = vsub.f32 %v3878_v39, %v3881_v42  ;;  %v4376_v42 = vsub.f32 %v3892_v60, %v3895_v7  ;;  %v4031_v7 = vld [vmem:[#allocation3 + $0x78] sm:$0xff] }
 0x42d   : > { %v1290_v24 = vmul.f32 1.442695, %v4371_v21  ;;  %v1306_v53 = vmul.f32 1.442695, %v4374_v50 }
 0x430   : > { %v1245_v23 = vpop.xlane.xlu0 %1244 }
 0x431   : > { %v3954_v26 = vmax.f32 %v3948_v17, %v1245_v23  ;;  %v1312_v23 = vmul.f32 1.442695, %v1285_v13  ;;  %v1548_v13 = vld [vmem:[#allocation5 + $0x18] sm:$0xff] }
 0x433   : > { %v1283_v32 = vsub.f32 %v3948_v17, %v3954_v26  ;;  %1757 = vst.msk [vmem:[#allocation3 + $0x48] sm:$0xff] %vm1530_vm1, %v3954_v26  ;;  %1369 = vperm.xlu1 %2867, %v3954_v26   ;;  %v1360_v52 = vpop.permute.xlu1 %1359 }
 0x434   : > { %v1409_v25 = vsub.f32 %v3761_v36, %v1360_v52  ;;  %v1223_v36 = vld [vmem:[#allocation3 + $0x68] sm:$0xff] }
 0x436   : > { %v1432_v41 = vmul.f32 1.442695, %v1409_v25  ;;  %v1365_v25 = vpop.permute.xlu2 %1364 }
 0x437   : > { %v1410_v60 = vsub.f32 %v3765_v37, %v1365_v25 }
 0x438   : > { %2881 = vpow2.f32 %v1432_v41 }
 0x43b   : > { %1685 = vmatmul.bf16.gmra.mxu3 %v1661_v47  ;;  %v1310_v47 = vmul.f32 1.442695, %v4376_v42 }
 0x43e   : > { %v3969_v19 = vpop.eup %2881 }
 0x443   : > { %v1355_v56 = vpop.permute.xlu0 %1354 }
 0x444   : > { %v1408_v44 = vsub.f32 %v3758_v34, %v1355_v56  ;;  %v1292_v34 = vmul.f32 1.442695, %v1275_v63 }
 0x446   : > { %v1430_v27 = vmul.f32 1.442695, %v1408_v44 }
 0x448   : > { %2883 = vpow2.f32 %v1430_v27  ;;  %v1434_v27 = vmul.f32 1.442695, %v1410_v60 }
 0x449   : > { %2885 = vpow2.f32 %v1292_v34 }
 0x44a   : > { %2887 = vpow2.f32 %v1290_v24 }
 0x44b   : > { %2889 = vpow2.f32 %v1300_v29 }
 0x44c   : > { %2891 = vpow2.f32 %v1298_v62  ;;  %v1224_v62 = vld [vmem:[#allocation3 + $0x70] sm:$0xff] }
 0x44d   : > { %2893 = vpow2.f32 %v1306_v53 }
 0x44e   : > { %v3971_v12 = vpop.eup %2883  ;;  %2895 = vpow2.f32 %v1304_v8 }
 0x44f   : > { %v1662_v14 = vpack.c.bf16 %v3969_v19, %v3971_v12  ;;  %v3989_v46 = vpop.eup %2885  ;;  %2897 = vpow2.f32 %v1312_v23 }
 0x450   : > { %v3995_v63 = vpop.eup %2887  ;;  %2899 = vpow2.f32 %v1310_v47 }
 0x451   : > { %1690 = vmatmul.bf16.gmra.mxu3 %v1662_v14  ;;  %v4001_v11 = vpop.eup %2889 }
 0x452   : > { %v4009_v4 = vpop.eup %2891 }
 0x453   : > { %v4012_v39 = vpop.eup %2893 }
 0x454   : > { %v4018_v5 = vpop.eup %2895 }
 0x455   : > { %v4021_v33 = vpop.eup %2897 }
 0x456   : > { %v4024_v52 = vpop.eup %2899 }
 0x45d   : > { %1254 = vmax.xlane.f32.xlu1 %v3975_v51 }
 0x465   : > { %v1257_v56 = vpop.xlane.xlu2 %1256 }
 0x466   : > { %v4034_v44 = vmax.f32 %v4031_v7, %v1257_v56 }
 0x468   : > { %v1289_v34 = vsub.f32 %v4031_v7, %v4034_v44  ;;  %1763 = vst.msk [vmem:[#allocation3 + $0x78] sm:$0xff] %vm1530_vm1, %v4034_v44 }
 0x46a   : > { %v1320_v54 = vmul.f32 1.442695, %v1289_v34 }
 0x46e   : > { %v1253_v59 = vpop.xlane.xlu0 %1252 }
 0x46f   : > { %v1271_v30 = vmax.f32 %v1223_v36, %v1253_v59 }
 0x471   : > { %1761 = vst.msk [vmem:[#allocation3 + $0x68] sm:$0xff] %vm1530_vm1, %v1271_v30  ;;  %1389 = vperm.xlu2 %2866, %v1271_v30   ;;  %v1287_v22 = vsub.f32 %v1223_v36, %v1271_v30 }
 0x476   : > { %1379 = vperm.xlu1 %2867, %v3915_v3   ;;  %v1316_v3 = vmul.f32 1.442695, %v1287_v22  ;;  %v4377_v22 = vsub.f32 %v3803_v55, %v3808_v58 }
 0x478   : > { %2901 = vpow2.f32 %v1316_v3  ;;  %v1294_v3 = vmul.f32 1.442695, %v4377_v22  ;;  %v1314_v22 = vmul.f32 1.442695, %v1286_v61 }
 0x479   : > { %1570 = vperm.xlu2 %2866, %v3989_v46   ;;  %2903 = vpow2.f32 %v1434_v27 }
 0x47e   : > { %1565 = vperm.xlu1 %2867, %v3995_v63   ;;  %v4027_v41 = vpop.eup %2901 }
 0x47f   : > { %v2904_v30 = vpop.eup %2903 }
 0x481   : > { %1590 = vperm.xlu2 %2866, %v4001_v11   ;;  %v1375_v58 = vpop.permute.xlu0 %1374 }
 0x486   : > { %1585 = vperm.xlu1 %2867, %v4009_v4  }
 0x489   : > { %1605 = vperm.xlu2 %2866, %v4012_v39  }
 0x48e   : > { %1600 = vperm.xlu1 %2867, %v4018_v5  }
 0x491   : > { %1620 = vperm.xlu2 %2866, %v4021_v33  }
 0x496   : > { %1615 = vperm.xlu1 %2867, %v4024_v52  }
 0x49e   : > { %1630 = vperm.xlu1 %2867, %v4027_v41   ;;  %v4041_v37 = vpop.f32.mrf.mxu3 }
 0x4a5   : > { %v1370_v14 = vpop.permute.xlu1 %1369 }
 0x4a6   : > { %v1411_v36 = vsub.f32 %v3865_v20, %v1370_v14  ;;  %v1678_v9 = vpop.f32.mrf.mxu3 }
 0x4a8   : > { %v1436_v59 = vmul.f32 1.442695, %v1411_v36  ;;  %v4378_v36 = vsub.f32 %v3825_v0, %v3828_v2 }
 0x4aa   : > { %2905 = vpow2.f32 %v1436_v59  ;;  %v1296_v55 = vmul.f32 1.442695, %v4378_v36  ;;  %v1412_v59 = vsub.f32 %v3772_v40, %v1375_v58  ;;  %v1308_v40 = vmul.f32 1.442695, %v1283_v32  ;;  %v1551_v32 = vld [vmem:[#allocation5 + $0x68] sm:$0xff] }
 0x4ae   : > { %v4046_v29 = vpop.f32.mrf.mxu3 }
 0x4b0   : > { %v4043_v21 = vpop.eup %2905 }
 0x4b1   : > { %v1663_v24 = vpack.c.bf16 %v4043_v21, %v2904_v30 }
 0x4b3   : > { %1695 = vmatmul.bf16.gmra.mxu3 %v1663_v24  ;;  %v4379_v24 = vsub.f32 %v3855_v16, %v3858_v18 }
 0x4b6   : > { %v4049_v20 = vpop.f32.mrf.mxu3 }
 0x4be   : > { %v4054_v6 = vpop.f32.mrf.mxu3 }
 0x4c6   : > { %v1688_v27 = vpop.f32.mrf.mxu3 }
 0x4c8   : > { %1482 = vadd.xlane.f32.xlu1 %v3931_v1 }
 0x4cb   : > { %v4051_v57 = vpop.permute.xlu2 %1389 }
 0x4d0   : > { %v1255_v50 = vpop.xlane.xlu1 %1254  ;;  %1488 = vadd.xlane.f32.xlu1 %v3940_v10  ;;  %v1552_v10 = vld [vmem:[#allocation5 + $0x20] sm:$0xff] }
 0x4d1   : > { %v1272_v53 = vmax.f32 %v1224_v62, %v1255_v50 }
 0x4d3   : > { %v1288_v8 = vsub.f32 %v1224_v62, %v1272_v53  ;;  %1762 = vst.msk [vmem:[#allocation3 + $0x70] sm:$0xff] %vm1530_vm1, %v1272_v53  ;;  %1394 = vperm.xlu0 %2865, %v1272_v53   ;;  %v1571_v23 = vpop.permute.xlu2 %1570  ;;  %v1438_v62 = vmul.f32 1.442695, %v1412_v59 }
 0x4d4   : > { %v1644_v42 = vmul.f32 %v1571_v23, %v1548_v13 }
 0x4d5   : > { %v1318_v47 = vmul.f32 1.442695, %v1288_v8 }
 0x4d6   : > { %v1717_v1 = vadd.f32 %v1678_v9, %v1644_v42  ;;  %v1302_v9 = vmul.f32 1.442695, %v4379_v24  ;;  %v1415_v42 = vsub.f32 %v3925_v49, %v4051_v57 }
 0x4d7   : > { %2907 = vpow2.f32 %v1318_v47 }
 0x4d8   : > { %1733 = vst [vmem:[#allocation5 + $0x18] sm:$0xff] %v1717_v1  ;;  %1492 = vadd.xlane.f32.xlu1 %v3961_v31  ;;  %2909 = vpow2.f32 %v1294_v3  ;;  %v1444_v1 = vmul.f32 1.442695, %v1415_v42  ;;  %v4095_v3 = vpop.f32.mrf.mxu3 }
 0x4d9   : > { %2911 = vpow2.f32 %v1296_v55 }
 0x4da   : > { %2913 = vpow2.f32 %v1302_v9 }
 0x4db   : > { %1399 = vperm.xlu0 %2865, %v4034_v44   ;;  %v1591_v25 = vpop.permute.xlu2 %1590  ;;  %2915 = vpow2.f32 %v1438_v62  ;;  %v1555_v44 = vld [vmem:[#allocation5 + $0x28] sm:$0xff]  ;;  %v1450_v62 = vld [vmem:[#allocation4] sm:$0xff] }
 0x4dc   : > { %v1648_v60 = vmul.f32 %v1591_v25, %v1552_v10 }
 0x4dd   : > { %v4062_v56 = vpop.eup %2907 }
 0x4de   : > { %v1721_v14 = vadd.f32 %v1688_v27, %v1648_v60  ;;  %1635 = vperm.xlu2 %2866, %v4062_v56   ;;  %v4068_v31 = vpop.eup %2909 }
 0x4df   : > { %v4076_v0 = vpop.eup %2911 }
 0x4e0   : > { %1737 = vst [vmem:[#allocation5 + $0x20] sm:$0xff] %v1721_v14  ;;  %1498 = vadd.xlane.f32.xlu1 %v2904_v30  ;;  %v1547_v30 = vld [vmem:[#allocation5] sm:$0xff]  ;;  %v4082_v16 = vpop.eup %2913  ;;  %v1693_v14 = vpop.f32.mrf.mxu3 }
 0x4e1   : > { %v4084_v8 = vpop.eup %2915 }
 0x4e3   : > { %1575 = vperm.xlu0 %2865, %v4068_v31   ;;  %v1606_v34 = vpop.permute.xlu2 %1605 }
 0x4e4   : > { %v1651_v24 = vmul.f32 %v1606_v34, %v1555_v44 }
 0x4e8   : > { %v1380_v50 = vpop.permute.xlu1 %1379 }
 0x4e9   : > { %v1413_v53 = vsub.f32 %v3777_v43, %v1380_v50  ;;  %v1385_v43 = vpop.permute.xlu0 %1384  ;;  %v1466_v50 = vmul.f32 %v3995_v63, %v1450_v62  ;;  %v1452_v62 = vld [vmem:[#allocation4 + $0x10] sm:$0xff] }
 0x4ea   : > { %v1414_v26 = vsub.f32 %v3782_v45, %v1385_v43  ;;  %v1554_v45 = vld [vmem:[#allocation5 + $0x10] sm:$0xff] }
 0x4eb   : > { %v1440_v2 = vmul.f32 1.442695, %v1413_v53  ;;  %1580 = vperm.xlu0 %2865, %v4076_v0  }
 0x4ed   : > { %2917 = vpow2.f32 %v1440_v2 }
 0x4ee   : > { %2919 = vpow2.f32 %v1308_v40 }
 0x4ef   : > { %2921 = vpow2.f32 %v1444_v1 }
 0x4f0   : > { %v1566_v13 = vpop.permute.xlu1 %1565  ;;  %2923 = vpow2.f32 %v1314_v22 }
 0x4f1   : > { %v1643_v18 = vmul.f32 %v1566_v13, %v1547_v30 }
 0x4f3   : > { %v2918_v23 = vpop.eup %2917  ;;  %v1716_v47 = vadd.f32 %v4041_v37, %v1643_v18  ;;  %1595 = vperm.xlu0 %2865, %v4082_v16   ;;  %v1442_v37 = vmul.f32 1.442695, %v1414_v26  ;;  %v1455_v18 = vld [vmem:[#allocation4 + $0x28] sm:$0xff] }
 0x4f4   : > { %1504 = vadd.xlane.f32.xlu1 %v2918_v23  ;;  %v1664_v17 = vpack.c.bf16 %v2918_v23, %v4084_v8  ;;  %v4097_v10 = vpop.eup %2919  ;;  %v1471_v43 = vmul.f32 %v4001_v11, %v1455_v18 }
 0x4f5   : > { %1732 = vst [vmem:[#allocation5] sm:$0xff] %v1716_v47  ;;  %2925 = vpow2.f32 %v1442_v37  ;;  %v2922_v61 = vpop.eup %2921  ;;  %v1550_v37 = vld [vmem:[#allocation5 + $0x60] sm:$0xff] }
 0x4f6   : > { %1700 = vmatmul.bf16.gmra.mxu3 %v1664_v17  ;;  %v4104_v27 = vpop.eup %2923  ;;  %2927 = vpow2.f32 %v1320_v54  ;;  %v1461_v54 = vld [vmem:[#allocation4 + $0x58] sm:$0xff] }
 0x4f8   : > { %v1586_v49 = vpop.permute.xlu1 %1585 }
 0x4f9   : > { %v1647_v57 = vmul.f32 %v1586_v49, %v1551_v32  ;;  %v1549_v32 = vld [vmem:[#allocation5 + $0x50] sm:$0xff] }
 0x4fb   : > { %v1720_v25 = vadd.f32 %v4054_v6, %v1647_v57  ;;  %1610 = vperm.xlu0 %2865, %v4097_v10   ;;  %v2926_v36 = vpop.eup %2925 }
 0x4fc   : > { %v1665_v6 = vpack.c.bf16 %v2922_v61, %v2926_v36  ;;  %v4108_v58 = vpop.eup %2927 }
 0x4fd   : > { %1736 = vst [vmem:[#allocation5 + $0x68] sm:$0xff] %v1720_v25 }
 0x500   : > { %v1601_v15 = vpop.permute.xlu1 %1600 }
 0x501   : > { %v1650_v60 = vmul.f32 %v1601_v15, %v1554_v45  ;;  %v1553_v45 = vld [vmem:[#allocation5 + $0x70] sm:$0xff] }
 0x503   : > { %v1723_v55 = vadd.f32 %v1693_v14, %v1650_v60  ;;  %1625 = vperm.xlu0 %2865, %v4104_v27   ;;  %v1477_v60 = vmul.f32 %v4021_v33, %v1461_v54 }
 0x505   : > { %1739 = vst [vmem:[#allocation5 + $0x10] sm:$0xff] %v1723_v55  ;;  %v1621_v55 = vpop.permute.xlu2 %1620 }
 0x506   : > { %1705 = vmatmul.bf16.gmra.mxu3 %v1665_v6  ;;  %v1556_v6 = vld [vmem:[#allocation5 + $0x40] sm:$0xff] }
 0x507   : > { %1486 = vadd.xlane.f32.xlu2 %v3942_v28 }
 0x508   : > { %v4113_v7 = vpop.permute.xlu1 %1615 }
 0x50b   : > { %1640 = vperm.xlu0 %2865, %v4108_v58  }
 0x50f   : > { %1494 = vadd.xlane.f32.xlu2 %v3971_v12 }
 0x510   : > { %v4115_v59 = vpop.permute.xlu1 %1630 }
 0x517   : > { %1500 = vadd.xlane.f32.xlu2 %v4043_v21  ;;  %v1453_v21 = vld [vmem:[#allocation4 + $0x18] sm:$0xff] }
 0x518   : > { %v1469_v2 = vmul.f32 %v4076_v0, %v1453_v21 }
 0x51f   : > { %1506 = vadd.xlane.f32.xlu2 %v2926_v36 }
 0x535   : > { %1484 = vadd.xlane.f32.xlu0 %v3934_v35 }
 0x536   : > { %v1696_v9 = vpop.f32.mrf.mxu3 }
 0x537   : > { %v1724_v28 = vadd.f32 %v1696_v9, %v1651_v24 }
 0x538   : > { %v4136_v9 = vpop.permute.xlu2 %1635 }
 0x539   : > { %1740 = vst [vmem:[#allocation5 + $0x28] sm:$0xff] %v1724_v28  ;;  %v1557_v28 = vld [vmem:[#allocation5 + $0x38] sm:$0xff] }
 0x53a   : > { %v1653_v33 = vmul.f32 %v4113_v7, %v1557_v28  ;;  %v1559_v7 = vld [vmem:[#allocation5 + $0x58] sm:$0xff] }
 0x53b   : > { %v1483_v53 = vpop.xlane.xlu1 %1482 }
 0x53c   : > { %v1514_v12 = vadd.f32 %v1483_v53, %v1466_v50 }
 0x53d   : > { %1490 = vadd.xlane.f32.xlu0 %v3963_v38 }
 0x53e   : > { %1531 = vst.msk [vmem:[#allocation4] sm:$0xff] %vm1530_vm1, %v1514_v12  ;;  %v1698_v24 = vpop.f32.mrf.mxu3 }
 0x543   : > { %v1489_v30 = vpop.xlane.xlu1 %1488 }
 0x544   : > { %v1517_v40 = vadd.f32 %v1489_v30, %v1469_v2  ;;  %v1558_v2 = vld [vmem:[#allocation5 + $0x8] sm:$0xff]  ;;  %v1456_v30 = vld [vmem:[#allocation4 + $0x30] sm:$0xff] }
 0x545   : > { %1496 = vadd.xlane.f32.xlu0 %v3969_v19  ;;  %v1395_v35 = vpop.permute.xlu0 %1394  ;;  %v1458_v19 = vld [vmem:[#allocation4 + $0x40] sm:$0xff] }
 0x546   : > { %1534 = vst.msk [vmem:[#allocation4 + $0x18] sm:$0xff] %vm1530_vm1, %v1517_v40  ;;  %v1416_v13 = vsub.f32 %v3975_v51, %v1395_v35  ;;  %v1474_v51 = vmul.f32 %v4012_v39, %v1458_v19  ;;  %v1654_v40 = vmul.f32 %v1621_v55, %v1558_v2 }
 0x548   : > { %v1446_v63 = vmul.f32 1.442695, %v1416_v13  ;;  %v1472_v13 = vmul.f32 %v4082_v16, %v1456_v30  ;;  %v1462_v16 = vld [vmem:[#allocation4 + $0x60] sm:$0xff] }
 0x54a   : > { %2929 = vpow2.f32 %v1446_v63 }
 0x54b   : > { %v1493_v38 = vpop.xlane.xlu1 %1492 }
 0x54c   : > { %v1519_v23 = vadd.f32 %v1493_v38, %v1471_v43 }
 0x54d   : > { %1502 = vadd.xlane.f32.xlu0 %v4084_v8  ;;  %v1400_v42 = vpop.permute.xlu0 %1399 }
 0x54e   : > { %1536 = vst.msk [vmem:[#allocation4 + $0x28] sm:$0xff] %vm1530_vm1, %v1519_v23  ;;  %v1417_v0 = vsub.f32 %v3950_v48, %v1400_v42 }
 0x550   : > { %v2930_v47 = vpop.eup %2929  ;;  %v1448_v17 = vmul.f32 1.442695, %v1417_v0 }
 0x551   : > { %1510 = vadd.xlane.f32.xlu1 %v2930_v47 }
 0x552   : > { %2931 = vpow2.f32 %v1448_v17 }
 0x553   : > { %v1499_v26 = vpop.xlane.xlu1 %1498 }
 0x554   : > { %v1522_v1 = vadd.f32 %v1499_v26, %v1474_v51  ;;  %v1560_v51 = vld [vmem:[#allocation5 + $0x48] sm:$0xff] }
 0x555   : > { %1508 = vadd.xlane.f32.xlu0 %v2922_v61  ;;  %v1576_v11 = vpop.permute.xlu0 %1575  ;;  %v1656_v26 = vmul.f32 %v4115_v59, %v1560_v51 }
 0x556   : > { %1539 = vst.msk [vmem:[#allocation4 + $0x40] sm:$0xff] %vm1530_vm1, %v1522_v1  ;;  %v1645_v8 = vmul.f32 %v1576_v11, %v1549_v32  ;;  %v1478_v1 = vmul.f32 %v4104_v27, %v1462_v16  ;;  %v1457_v27 = vld [vmem:[#allocation4 + $0x38] sm:$0xff] }
 0x557   : > { %v1473_v54 = vmul.f32 %v4018_v5, %v1457_v27 }
 0x558   : > { %v2932_v22 = vpop.eup %2931  ;;  %v1718_v49 = vadd.f32 %v4046_v29, %v1645_v8 }
 0x559   : > { %1512 = vadd.xlane.f32.xlu2 %v2932_v22  ;;  %v1666_v48 = vpack.c.bf16 %v2932_v22, %v2930_v47 }
 0x55a   : > { %1734 = vst [vmem:[#allocation5 + $0x50] sm:$0xff] %v1718_v49  ;;  %v1451_v49 = vld [vmem:[#allocation4 + $0x8] sm:$0xff] }
 0x55b   : > { %1710 = vmatmul.bf16.gmra.mxu3 %v1666_v48  ;;  %v1467_v48 = vmul.f32 %v3989_v46, %v1451_v49 }
 0x55d   : > { %v1581_v57 = vpop.permute.xlu0 %1580 }
 0x55e   : > { %v1646_v25 = vmul.f32 %v1581_v57, %v1550_v37 }
 0x560   : > { %v1719_v39 = vadd.f32 %v4049_v20, %v1646_v25  ;;  %v1454_v25 = vld [vmem:[#allocation4 + $0x20] sm:$0xff] }
 0x561   : > { %v1470_v59 = vmul.f32 %v4009_v4, %v1454_v25 }
 0x562   : > { %1735 = vst [vmem:[#allocation5 + $0x60] sm:$0xff] %v1719_v39 }
 0x565   : > { %v1596_v15 = vpop.permute.xlu0 %1595 }
 0x566   : > { %v1649_v61 = vmul.f32 %v1596_v15, %v1553_v45 }
 0x567   : > { %v1505_v14 = vpop.xlane.xlu1 %1504 }
 0x568   : > { %v1722_v36 = vadd.f32 %v4095_v3, %v1649_v61  ;;  %v1525_v29 = vadd.f32 %v1505_v14, %v1477_v60  ;;  %v1468_v3 = vmul.f32 %v4068_v31, %v1452_v62  ;;  %v1459_v31 = vld [vmem:[#allocation4 + $0x48] sm:$0xff]  ;;  %v1460_v60 = vld [vmem:[#allocation4 + $0x50] sm:$0xff] }
 0x569   : > { %v1475_v0 = vmul.f32 %v4097_v10, %v1459_v31  ;;  %v1476_v46 = vmul.f32 %v4024_v52, %v1460_v60 }
 0x56a   : > { %1738 = vst [vmem:[#allocation5 + $0x70] sm:$0xff] %v1722_v36  ;;  %v1464_v36 = vld [vmem:[#allocation4 + $0x70] sm:$0xff] }
 0x56b   : > { %1542 = vst.msk [vmem:[#allocation4 + $0x58] sm:$0xff] %vm1530_vm1, %v1525_v29  ;;  %v1480_v4 = vmul.f32 %v4062_v56, %v1464_v36 }
 0x56d   : > { %v1611_v44 = vpop.permute.xlu0 %1610 }
 0x56e   : > { %v1652_v34 = vmul.f32 %v1611_v44, %v1556_v6  ;;  %v1463_v6 = vld [vmem:[#allocation4 + $0x68] sm:$0xff] }
 0x56f   : > { %v1479_v5 = vmul.f32 %v4027_v41, %v1463_v6 }
 0x570   : > { %v1725_v20 = vadd.f32 %v1698_v24, %v1652_v34  ;;  %v1465_v24 = vld [vmem:[#allocation4 + $0x78] sm:$0xff] }
 0x571   : > { %v1481_v52 = vmul.f32 %v4108_v58, %v1465_v24 }
 0x572   : > { %1741 = vst [vmem:[#allocation5 + $0x40] sm:$0xff] %v1725_v20 }
 0x575   : > { %v1626_v38 = vpop.permute.xlu0 %1625 }
 0x576   : > { %v1655_v23 = vmul.f32 %v1626_v38, %v1559_v7 }
 0x579   : > { %v1701_v50 = vpop.f32.mrf.mxu3 }
 0x57a   : > { %v1726_v53 = vadd.f32 %v1701_v50, %v1653_v33  ;;  %v1487_v12 = vpop.xlane.xlu2 %1486  ;;  %v1561_v33 = vld [vmem:[#allocation5 + $0x78] sm:$0xff] }
 0x57b   : > { %v1516_v21 = vadd.f32 %v1487_v12, %v1468_v3  ;;  %v1657_v56 = vmul.f32 %v4136_v9, %v1561_v33 }
 0x57c   : > { %1742 = vst [vmem:[#allocation5 + $0x38] sm:$0xff] %v1726_v53  ;;  %v1562_v53 = vld [vmem:[#allocation5 + $0x30] sm:$0xff] }
 0x57d   : > { %1533 = vst.msk [vmem:[#allocation4 + $0x10] sm:$0xff] %vm1530_vm1, %v1516_v21  ;;  %v1641_v10 = vpop.permute.xlu0 %1640 }
 0x57e   : > { %v1658_v12 = vmul.f32 %v1641_v10, %v1562_v53 }
 0x581   : > { %v1703_v35 = vpop.f32.mrf.mxu3 }
 0x582   : > { %v1727_v18 = vadd.f32 %v1703_v35, %v1654_v40  ;;  %v1495_v63 = vpop.xlane.xlu2 %1494 }
 0x583   : > { %v1520_v43 = vadd.f32 %v1495_v63, %v1472_v13 }
 0x584   : > { %1743 = vst [vmem:[#allocation5 + $0x8] sm:$0xff] %v1727_v18 }
 0x585   : > { %1537 = vst.msk [vmem:[#allocation4 + $0x30] sm:$0xff] %vm1530_vm1, %v1520_v43 }
 0x589   : > { %v1706_v42 = vpop.f32.mrf.mxu3 }
 0x58a   : > { %v1728_v19 = vadd.f32 %v1706_v42, %v1655_v23  ;;  %v1501_v47 = vpop.xlane.xlu2 %1500 }
 0x58b   : > { %v1523_v17 = vadd.f32 %v1501_v47, %v1475_v0 }
 0x58c   : > { %1744 = vst [vmem:[#allocation5 + $0x58] sm:$0xff] %v1728_v19 }
 0x58d   : > { %1540 = vst.msk [vmem:[#allocation4 + $0x48] sm:$0xff] %vm1530_vm1, %v1523_v17 }
 0x591   : > { %v1708_v32 = vpop.f32.mrf.mxu3 }
 0x592   : > { %v1729_v11 = vadd.f32 %v1708_v32, %v1656_v26  ;;  %v1507_v8 = vpop.xlane.xlu2 %1506 }
 0x593   : > { %v1526_v22 = vadd.f32 %v1507_v8, %v1478_v1 }
 0x594   : > { %1745 = vst [vmem:[#allocation5 + $0x48] sm:$0xff] %v1729_v11 }
 0x595   : > { %1543 = vst.msk [vmem:[#allocation4 + $0x60] sm:$0xff] %vm1530_vm1, %v1526_v22 }
 0x5a8   : > { %v1485_v37 = vpop.xlane.xlu0 %1484 }
 0x5a9   : > { %v1515_v57 = vadd.f32 %v1485_v37, %v1467_v48 }
 0x5ab   : > { %1532 = vst.msk [vmem:[#allocation4 + $0x8] sm:$0xff] %vm1530_vm1, %v1515_v57 }
 0x5b0   : > { %v1491_v39 = vpop.xlane.xlu0 %1490 }
 0x5b1   : > { %v1518_v45 = vadd.f32 %v1491_v39, %v1470_v59 }
 0x5b3   : > { %1535 = vst.msk [vmem:[#allocation4 + $0x20] sm:$0xff] %vm1530_vm1, %v1518_v45 }
 0x5b8   : > { %v1497_v15 = vpop.xlane.xlu0 %1496 }
 0x5b9   : > { %v1521_v61 = vadd.f32 %v1497_v15, %v1473_v54 }
 0x5bb   : > { %1538 = vst.msk [vmem:[#allocation4 + $0x38] sm:$0xff] %vm1530_vm1, %v1521_v61 }
 0x5c0   : > { %v1503_v14 = vpop.xlane.xlu0 %1502 }
 0x5c1   : > { %v1524_v29 = vadd.f32 %v1503_v14, %v1476_v46 }
 0x5c3   : > { %1541 = vst.msk [vmem:[#allocation4 + $0x50] sm:$0xff] %vm1530_vm1, %v1524_v29 }
 0x5c4   : > { %v1511_v55 = vpop.xlane.xlu1 %1510 }
 0x5c5   : > { %v1528_v44 = vadd.f32 %v1511_v55, %v1480_v4 }
 0x5c7   : > { %1545 = vst.msk [vmem:[#allocation4 + $0x70] sm:$0xff] %vm1530_vm1, %v1528_v44 }
 0x5c8   : > { %v1509_v34 = vpop.xlane.xlu0 %1508 }
 0x5c9   : > { %v1527_v20 = vadd.f32 %v1509_v34, %v1479_v5 }
 0x5cb   : > { %1544 = vst.msk [vmem:[#allocation4 + $0x68] sm:$0xff] %vm1530_vm1, %v1527_v20 }
 0x5cc   : > { %v1513_v28 = vpop.xlane.xlu2 %1512 }
 0x5cd   : > { %v1529_v62 = vadd.f32 %v1513_v28, %v1481_v52 }
 0x5cf   : > { %1546 = vst.msk [vmem:[#allocation4 + $0x78] sm:$0xff] %vm1530_vm1, %v1529_v62 }
 0x5de   : > { %v1711_v50 = vpop.f32.mrf.mxu3 }
 0x5df   : > { %v1730_v3 = vadd.f32 %v1711_v50, %v1657_v56 }
 0x5e1   : > { %1746 = vst [vmem:[#allocation5 + $0x78] sm:$0xff] %v1730_v3 }
 0x5e5   : > { %1767 = sbr.rel (%p2497_p1) target bundleno = 1821 (0x71d), region = 88 }
 0x5e6   : > { %v1713_v41 = vpop.f32.mrf.mxu3 }
 0x5e7   : > { %v1731_v21 = vadd.f32 %v1713_v41, %v1658_v12 }
 0x5e9   : > { %1747 = vst [vmem:[#allocation5 + $0x30] sm:$0xff] %v1731_v21 }
 0x5ea   : > { %v1796_v2 = vld [vmem:[#allocation4 + $0x60] sm:$0xff]  ;;  %v3315_v40 = vmov 0   ;;  %v1797_v9 = vld [vmem:[#allocation4 + $0x68] sm:$0xff]  ;;  %v1794_v42 = vld [vmem:[#allocation4 + $0x50] sm:$0xff] }
 0x5eb   : > { %v1792_v58 = vld [vmem:[#allocation4 + $0x40] sm:$0xff]  ;;  %2935 = vset.pattern.permute.xlu2 %v3315_v40  ;;  %2934 = vset.pattern.permute.xlu1 %v3315_v40  ;;  %2937 = vrcp.f32 %v1796_v2  ;;  %v1793_v35 = vld [vmem:[#allocation4 + $0x48] sm:$0xff]  ;;  %v2591_v19 = vld [vmem:[#allocation15 + $0x38] sm:$0xff] }
 0x5ec   : > { %v1784_v30 = vld [vmem:[#allocation4] sm:$0xff]  ;;  %2933 = vset.pattern.permute.xlu0 %v3315_v40  ;;  %2939 = vrcp.f32 %v1792_v58  ;;  %v1785_v13 = vld [vmem:[#allocation4 + $0x8] sm:$0xff]  ;;  %1988 = vmatpush.bf16.msra.mxu0 %v2591_v19  ;;  %v1798_v47 = vld [vmem:[#allocation4 + $0x70] sm:$0xff] }
 0x5ed   : > { %2941 = vrcp.f32 %v1784_v30  ;;  %v1789_v7 = vld [vmem:[#allocation4 + $0x28] sm:$0xff]  ;;  %v1788_v31 = vld [vmem:[#allocation4 + $0x20] sm:$0xff]  ;;  %2672 = vmatpush.bf16.msra.mxu2 %v2591_v19  ;;  %2673 = vmatpush.bf16.msra.mxu3 %v2591_v19  ;;  %v1795_v51 = vld [vmem:[#allocation4 + $0x58] sm:$0xff] }
 0x5ee   : > { %2943 = vrcp.f32 %v1797_v9  ;;  %2671 = vmatpush.bf16.msra.mxu1 %v2591_v19  ;;  %v1799_v26 = vld [vmem:[#allocation4 + $0x78] sm:$0xff]  ;;  %v1786_v8 = vld [vmem:[#allocation4 + $0x10] sm:$0xff]  ;;  %v2589_v45 = vld [vmem:[#allocation15 + $0x28] sm:$0xff] }
 0x5ef   : > { %2945 = vrcp.f32 %v1793_v35  ;;  %v1787_v1 = vld [vmem:[#allocation4 + $0x18] sm:$0xff]  ;;  %v1790_v10 = vld [vmem:[#allocation4 + $0x30] sm:$0xff]  ;;  %v2588_v27 = vld [vmem:[#allocation15 + $0x20] sm:$0xff] }
 0x5f0   : > { %2947 = vrcp.f32 %v1785_v13  ;;  %v1791_v37 = vld [vmem:[#allocation4 + $0x38] sm:$0xff]  ;;  %v2590_v39 = vld [vmem:[#allocation15 + $0x30] sm:$0xff]  ;;  %v2585_v61 = vld [vmem:[#allocation15 + $0x8] sm:$0xff] }
 0x5f1   : > { %v2938_v18 = vpop.eup %2937  ;;  %2949 = vrcp.f32 %v1789_v7  ;;  %1989 = vmatpush.bf16.msra.mxu0 %v2590_v39  ;;  %2675 = vmatpush.bf16.msra.mxu2 %v2590_v39  ;;  %v2587_v54 = vld [vmem:[#allocation15 + $0x18] sm:$0xff]  ;;  %v2586_v15 = vld [vmem:[#allocation15 + $0x10] sm:$0xff]  ;;  %v2584_v60 = vld [vmem:[#allocation15] sm:$0xff] }
 0x5f2   : > { %v2940_v63 = vpop.eup %2939  ;;  %1878 = vperm.xlu1 %2934, %v2938_v18   ;;  %2951 = vrcp.f32 %v1788_v31  ;;  %2676 = vmatpush.bf16.msra.mxu3 %v2590_v39  ;;  %v1768_v14 = vld [vmem:[#allocation5] sm:$0xff]  ;;  %v1769_v36 = vld [vmem:[#allocation5 + $0x18] sm:$0xff]  ;;  %v1781_v24 = vld [vmem:[#allocation5 + $0x48] sm:$0xff] }
 0x5f3   : > { %v2942_v43 = vpop.eup %2941  ;;  %1858 = vperm.xlu0 %2933, %v2940_v63   ;;  %2953 = vrcp.f32 %v1794_v42  ;;  %2674 = vmatpush.bf16.msra.mxu1 %v2590_v39  ;;  %v1780_v34 = vld [vmem:[#allocation5 + $0x58] sm:$0xff]  ;;  %v1776_v52 = vld [vmem:[#allocation5 + $0x28] sm:$0xff]  ;;  %v1777_v28 = vld [vmem:[#allocation5 + $0x40] sm:$0xff] }
 0x5f4   : > { %1818 = vperm.xlu2 %2935, %v2942_v43   ;;  %v2944_v38 = vpop.eup %2943  ;;  %2955 = vrcp.f32 %v1798_v47  ;;  %v1773_v21 = vld [vmem:[#allocation5 + $0x20] sm:$0xff]  ;;  %v1772_v2 = vld [vmem:[#allocation5 + $0x68] sm:$0xff]  ;;  %v1783_v13 = vld [vmem:[#allocation5 + $0x30] sm:$0xff] }
 0x5f5   : > { %v2946_v23 = vpop.eup %2945  ;;  %2957 = vrcp.f32 %v1795_v51  ;;  %1990 = vmatpush.bf16.msra.mxu0 %v2589_v45  ;;  %2678 = vmatpush.bf16.msra.mxu2 %v2589_v45  ;;  %v1782_v18 = vld [vmem:[#allocation5 + $0x78] sm:$0xff]  ;;  %v1779_v43 = vld [vmem:[#allocation5 + $0x8] sm:$0xff]  ;;  %v1771_v51 = vld [vmem:[#allocation5 + $0x60] sm:$0xff] }
 0x5f6   : > { %v2948_v0 = vpop.eup %2947  ;;  %2959 = vrcp.f32 %v1799_v26  ;;  %2679 = vmatpush.bf16.msra.mxu3 %v2589_v45  ;;  %v1778_v63 = vld [vmem:[#allocation5 + $0x38] sm:$0xff] }
 0x5f7   : > { %v2950_v17 = vpop.eup %2949  ;;  %2961 = vrcp.f32 %v1787_v1  ;;  %2677 = vmatpush.bf16.msra.mxu1 %v2589_v45  ;;  %v2037_v45 = vld [vmem:[%s3623_s16] sm:$0xff] }
 0x5f8   : > { %v2952_v16 = vpop.eup %2951  ;;  %2963 = vrcp.f32 %v1786_v8 }
 0x5f9   : > { %v2954_v32 = vpop.eup %2953  ;;  %2965 = vrcp.f32 %v1790_v10  ;;  %1991 = vmatpush.bf16.msra.mxu0 %v2588_v27  ;;  %2681 = vmatpush.bf16.msra.mxu2 %v2588_v27  ;;  %v1774_v10 = vld [vmem:[#allocation5 + $0x70] sm:$0xff] }
 0x5fa   : > { %1883 = vperm.xlu1 %2934, %v2944_v38   ;;  %v2956_v11 = vpop.eup %2955  ;;  %2967 = vrcp.f32 %v1791_v37  ;;  %2682 = vmatpush.bf16.msra.mxu3 %v2588_v27 }
 0x5fb   : > { %1863 = vperm.xlu0 %2933, %v2946_v23   ;;  %v2958_v22 = vpop.eup %2957  ;;  %2680 = vmatpush.bf16.msra.mxu1 %v2588_v27 }
 0x5fc   : > { %1823 = vperm.xlu2 %2935, %v2948_v0   ;;  %v2960_v49 = vpop.eup %2959 }
 0x5fd   : > { %v2962_v48 = vpop.eup %2961  ;;  %1992 = vmatpush.bf16.msra.mxu0 %v2587_v54  ;;  %2684 = vmatpush.bf16.msra.mxu2 %v2587_v54 }
 0x5fe   : > { %v2964_v57 = vpop.eup %2963  ;;  %2685 = vmatpush.bf16.msra.mxu3 %v2587_v54 }
 0x5ff   : > { %v2966_v25 = vpop.eup %2965  ;;  %2683 = vmatpush.bf16.msra.mxu1 %v2587_v54 }
 0x600   : > { %v2968_v59 = vpop.eup %2967 }
 0x601   : > { %1993 = vmatpush.bf16.msra.mxu0 %v2586_v15  ;;  %2687 = vmatpush.bf16.msra.mxu2 %v2586_v15 }
 0x602   : > { %1843 = vperm.xlu1 %2934, %v2950_v17   ;;  %2688 = vmatpush.bf16.msra.mxu3 %v2586_v15 }
 0x603   : > { %1838 = vperm.xlu0 %2933, %v2952_v16   ;;  %2686 = vmatpush.bf16.msra.mxu1 %v2586_v15  ;;  %v1770_v16 = vld [vmem:[#allocation5 + $0x50] sm:$0xff] }
 0x604   : > { %1868 = vperm.xlu2 %2935, %v2954_v32  }
 0x605   : > { %1994 = vmatpush.bf16.msra.mxu0 %v2585_v61  ;;  %2690 = vmatpush.bf16.msra.mxu2 %v2585_v61 }
 0x606   : > { %2691 = vmatpush.bf16.msra.mxu3 %v2585_v61 }
 0x607   : > { %2689 = vmatpush.bf16.msra.mxu1 %v2585_v61  ;;  %v2038_v61 = vld [vmem:[%s3623_s16 + $0x8] sm:$0xff] }
 0x609   : > { %1995 = vmatpush.bf16.msra.mxu0 %v2584_v60  ;;  %2693 = vmatpush.bf16.msra.mxu2 %v2584_v60 }
 0x60a   : > { %1888 = vperm.xlu1 %2934, %v2956_v11   ;;  %2694 = vmatpush.bf16.msra.mxu3 %v2584_v60 }
 0x60b   : > { %1873 = vperm.xlu0 %2933, %v2958_v22   ;;  %2692 = vmatpush.bf16.msra.mxu1 %v2584_v60 }
 0x60c   : > { %1893 = vperm.xlu2 %2935, %v2960_v49   ;;  %v1775_v49 = vld [vmem:[#allocation5 + $0x10] sm:$0xff] }
 0x612   : > { %1833 = vperm.xlu1 %2934, %v2962_v48  }
 0x613   : > { %1828 = vperm.xlu0 %2933, %v2964_v57  }
 0x614   : > { %1848 = vperm.xlu2 %2935, %v2966_v25  }
 0x61b   : > { %1853 = vperm.xlu0 %2933, %v2968_v59   ;;  %v4167_v59 = vld [vmem:[%s4381_s28] ss:$0 sm:$0xff] }
 0x64e   : > { %v1819_v46 = vpop.permute.xlu2 %1818 }
 0x64f   : > { %v1896_v29 = vmul.f32 %v1819_v46, %v1768_v14 }
 0x656   : > { %v1824_v4 = vpop.permute.xlu2 %1823 }
 0x657   : > { %v1897_v55 = vmul.f32 %v1824_v4, %v1769_v36  ;;  %v2049_v36 = vld [vmem:[%s3623_s16 + $0x60] sm:$0xff] }
 0x658   : > { %v2045_v4 = vld [vmem:[%s3623_s16 + $0x40] sm:$0xff] }
 0x659   : > { %v1912_v6 = vpack.c.bf16 %v1897_v55, %v1896_v29 }
 0x65b   : > { %1996 = vmatmul.bf16.vlgmr.msra.gmra.mxu0 %v1912_v6 }
 0x65e   : > { %v1869_v41 = vpop.permute.xlu2 %1868 }
 0x65f   : > { %v1906_v0 = vmul.f32 %v1869_v41, %v1778_v63  ;;  %v2042_v41 = vld [vmem:[%s3623_s16 + $0x28] sm:$0xff] }
 0x664   : > { %v1879_v44 = vpop.permute.xlu1 %1878 }
 0x665   : > { %v1859_v5 = vpop.permute.xlu0 %1858  ;;  %v1908_v20 = vmul.f32 %v1879_v44, %v1780_v34  ;;  %v2041_v34 = vld [vmem:[%s3623_s16 + $0x20] sm:$0xff] }
 0x666   : > { %v1904_v50 = vmul.f32 %v1859_v5, %v1776_v52  ;;  %v1894_v7 = vpop.permute.xlu2 %1893 }
 0x667   : > { %v1911_v31 = vmul.f32 %v1894_v7, %v1783_v13  ;;  %v2039_v7 = vld [vmem:[%s3623_s16 + $0x10] sm:$0xff] }
 0x66c   : > { %v1884_v62 = vpop.permute.xlu1 %1883 }
 0x66d   : > { %v1909_v33 = vmul.f32 %v1884_v62, %v1781_v24  ;;  %v1864_v56 = vpop.permute.xlu0 %1863  ;;  %v2050_v62 = vld [vmem:[%s3623_s16 + $0x68] sm:$0xff] }
 0x66e   : > { %v1905_v3 = vmul.f32 %v1864_v56, %v1777_v28  ;;  %v1849_v22 = vpop.permute.xlu2 %1848  ;;  %v2046_v56 = vld [vmem:[%s3623_s16 + $0x48] sm:$0xff] }
 0x66f   : > { %v1918_v53 = vpack.c.bf16 %v1909_v33, %v1908_v20  ;;  %v1902_v37 = vmul.f32 %v1849_v22, %v1774_v10 }
 0x670   : > { %v1916_v12 = vpack.c.bf16 %v1905_v3, %v1904_v50 }
 0x671   : > { %2026 = vmatmul.bf16.vlgmr.msra.gmra.mxu3 %v1918_v53 }
 0x672   : > { %2016 = vmatmul.bf16.vlgmr.msra.gmra.mxu2 %v1916_v12 }
 0x674   : > { %v1844_v58 = vpop.permute.xlu1 %1843 }
 0x675   : > { %v1901_v30 = vmul.f32 %v1844_v58, %v1773_v21  ;;  %v1839_v40 = vpop.permute.xlu0 %1838 }
 0x676   : > { %v1900_v9 = vmul.f32 %v1839_v40, %v1772_v2  ;;  %v2051_v40 = vld [vmem:[%s3623_s16 + $0x70] sm:$0xff] }
 0x678   : > { %v1914_v35 = vpack.c.bf16 %v1901_v30, %v1900_v9 }
 0x67a   : > { %2006 = vmatmul.bf16.vlgmr.msra.gmra.mxu1 %v1914_v35  ;;  %v2047_v35 = vld [vmem:[%s3623_s16 + $0x50] sm:$0xff] }
 0x67c   : > { %v1889_v38 = vpop.permute.xlu1 %1888 }
 0x67d   : > { %v1910_v23 = vmul.f32 %v1889_v38, %v1782_v18  ;;  %v1874_v42 = vpop.permute.xlu0 %1873 }
 0x67e   : > { %v1907_v19 = vmul.f32 %v1874_v42, %v1779_v43 }
 0x67f   : > { %v1919_v47 = vpack.c.bf16 %v1911_v31, %v1910_v23 }
 0x680   : > { %v1917_v17 = vpack.c.bf16 %v1907_v19, %v1906_v0  ;;  %v2052_v0 = vld [vmem:[%s3623_s16 + $0x78] sm:$0xff] }
 0x681   : > { %2031 = vmatmul.bf16.gmra.mxu3 %v1919_v47  ;;  %v2048_v47 = vld [vmem:[%s3623_s16 + $0x58] sm:$0xff] }
 0x682   : > { %2021 = vmatmul.bf16.gmra.mxu2 %v1917_v17 }
 0x684   : > { %v1834_v26 = vpop.permute.xlu1 %1833 }
 0x685   : > { %v1899_v32 = vmul.f32 %v1834_v26, %v1771_v51  ;;  %v1829_v1 = vpop.permute.xlu0 %1828 }
 0x686   : > { %v1898_v11 = vmul.f32 %v1829_v1, %v1770_v16 }
 0x688   : > { %v1913_v8 = vpack.c.bf16 %v1899_v32, %v1898_v11  ;;  %v2040_v32 = vld [vmem:[%s3623_s16 + $0x18] sm:$0xff]  ;;  %v2043_v11 = vld [vmem:[%s3623_s16 + $0x30] sm:$0xff] }
 0x68a   : > { %2001 = vmatmul.bf16.gmra.mxu0 %v1913_v8 }
 0x68d   : > { %v1854_v48 = vpop.permute.xlu0 %1853 }
 0x68e   : > { %v1903_v57 = vmul.f32 %v1854_v48, %v1775_v49 }
 0x690   : > { %v1915_v25 = vpack.c.bf16 %v1903_v57, %v1902_v37  ;;  %v2044_v57 = vld [vmem:[%s3623_s16 + $0x38] sm:$0xff] }
 0x692   : > { %2011 = vmatmul.bf16.gmra.mxu1 %v1915_v25 }
 0x6d8   : > { %v1997_v39 = vpop.f32.mrf.mxu0 }
 0x6d9   : > { %v1998_v27 = vadd.f32 %v4167_v59, %v1997_v39 }
 0x6db   : > { %v2053_v54 = vadd.f32 %v2037_v45, %v1998_v27 }
 0x6dd   : > { %2069 = vst [vmem:[%s3637_s24] sm:$0xff] %v2053_v54 }
 0x6e0   : > { %v1999_v15 = vpop.f32.mrf.mxu0 }
 0x6e1   : > { %v2000_v60 = vadd.f32 %v4167_v59, %v1999_v15 }
 0x6e3   : > { %v2054_v46 = vadd.f32 %v2038_v61, %v2000_v60 }
 0x6e5   : > { %2070 = vst [vmem:[%s3637_s24 + $0x8] sm:$0xff] %v2054_v46 }
 0x6f4   : > { %v2027_v14 = vpop.f32.mrf.mxu3 }
 0x6f5   : > { %v2017_v29 = vpop.f32.mrf.mxu2  ;;  %v2028_v55 = vadd.f32 %v4167_v59, %v2027_v14 }
 0x6f6   : > { %v2018_v6 = vadd.f32 %v4167_v59, %v2017_v29 }
 0x6f7   : > { %v2065_v44 = vadd.f32 %v2049_v36, %v2028_v55  ;;  %v2007_v5 = vpop.f32.mrf.mxu1 }
 0x6f8   : > { %v2061_v24 = vadd.f32 %v2045_v4, %v2018_v6  ;;  %v2008_v20 = vadd.f32 %v4167_v59, %v2007_v5 }
 0x6f9   : > { %2081 = vst [vmem:[%s3637_s24 + $0x60] sm:$0xff] %v2065_v44 }
 0x6fa   : > { %2077 = vst [vmem:[%s3637_s24 + $0x40] sm:$0xff] %v2061_v24  ;;  %v2057_v52 = vadd.f32 %v2041_v34, %v2008_v20 }
 0x6fc   : > { %2073 = vst [vmem:[%s3637_s24 + $0x20] sm:$0xff] %v2057_v52  ;;  %v2029_v28 = vpop.f32.mrf.mxu3 }
 0x6fd   : > { %v2019_v33 = vpop.f32.mrf.mxu2  ;;  %v2030_v50 = vadd.f32 %v4167_v59, %v2029_v28 }
 0x6fe   : > { %v2020_v3 = vadd.f32 %v4167_v59, %v2019_v33 }
 0x6ff   : > { %v2066_v53 = vadd.f32 %v2050_v62, %v2030_v50  ;;  %v2009_v12 = vpop.f32.mrf.mxu1 }
 0x700   : > { %v2062_v21 = vadd.f32 %v2046_v56, %v2020_v3  ;;  %v2010_v2 = vadd.f32 %v4167_v59, %v2009_v12 }
 0x701   : > { %2082 = vst [vmem:[%s3637_s24 + $0x68] sm:$0xff] %v2066_v53 }
 0x702   : > { %2078 = vst [vmem:[%s3637_s24 + $0x48] sm:$0xff] %v2062_v21  ;;  %v2058_v58 = vadd.f32 %v2042_v41, %v2010_v2 }
 0x704   : > { %2074 = vst [vmem:[%s3637_s24 + $0x28] sm:$0xff] %v2058_v58  ;;  %v2032_v30 = vpop.f32.mrf.mxu3 }
 0x705   : > { %v2022_v9 = vpop.f32.mrf.mxu2  ;;  %v2033_v13 = vadd.f32 %v4167_v59, %v2032_v30 }
 0x706   : > { %v2023_v18 = vadd.f32 %v4167_v59, %v2022_v9 }
 0x707   : > { %v2067_v63 = vadd.f32 %v2051_v40, %v2033_v13  ;;  %v2002_v43 = vpop.f32.mrf.mxu0 }
 0x708   : > { %v2063_v38 = vadd.f32 %v2047_v35, %v2023_v18  ;;  %v2003_v31 = vadd.f32 %v4167_v59, %v2002_v43 }
 0x709   : > { %2083 = vst [vmem:[%s3637_s24 + $0x70] sm:$0xff] %v2067_v63 }
 0x70a   : > { %2079 = vst [vmem:[%s3637_s24 + $0x50] sm:$0xff] %v2063_v38  ;;  %v2055_v23 = vadd.f32 %v2039_v7, %v2003_v31 }
 0x70c   : > { %2071 = vst [vmem:[%s3637_s24 + $0x10] sm:$0xff] %v2055_v23  ;;  %v2034_v42 = vpop.f32.mrf.mxu3 }
 0x70d   : > { %v2024_v19 = vpop.f32.mrf.mxu2  ;;  %v2035_v17 = vadd.f32 %v4167_v59, %v2034_v42 }
 0x70e   : > { %v2025_v51 = vadd.f32 %v4167_v59, %v2024_v19 }
 0x70f   : > { %v2068_v16 = vadd.f32 %v2052_v0, %v2035_v17  ;;  %v2004_v26 = vpop.f32.mrf.mxu0  ;;  %v2012_v1 = vpop.f32.mrf.mxu1 }
 0x710   : > { %v2064_v8 = vadd.f32 %v2048_v47, %v2025_v51  ;;  %v2005_v22 = vadd.f32 %v4167_v59, %v2004_v26  ;;  %v2013_v10 = vadd.f32 %v4167_v59, %v2012_v1 }
 0x711   : > { %2084 = vst [vmem:[%s3637_s24 + $0x78] sm:$0xff] %v2068_v16 }
 0x712   : > { %2080 = vst [vmem:[%s3637_s24 + $0x58] sm:$0xff] %v2064_v8  ;;  %v2056_v49 = vadd.f32 %v2040_v32, %v2005_v22  ;;  %v2059_v48 = vadd.f32 %v2043_v11, %v2013_v10 }
 0x714   : > { %2072 = vst [vmem:[%s3637_s24 + $0x18] sm:$0xff] %v2056_v49 }
 0x715   : > { %2075 = vst [vmem:[%s3637_s24 + $0x30] sm:$0xff] %v2059_v48 }
 0x717   : > { %v2014_v37 = vpop.f32.mrf.mxu1 }
 0x718   : > { %v2015_v25 = vadd.f32 %v4167_v59, %v2014_v37 }
 0x71a   : > { %v2060_v39 = vadd.f32 %v2044_v57, %v2015_v25 }
 0x71c   : > { %2076 = vst [vmem:[%s3637_s24 + $0x38] sm:$0xff] %v2060_v39 }
 0x71d PF: > { %s4382_s8 = sld [smem:[#allocation27_spill]]  ;;  %s2100_s5 = sshll.u32 %s3637_s24, 4  ;;  %s2101_s5 = int_to_ptr.vmem [resolvable:$true] %s2100_s5 }
 0x71e   : > { %s4383_s0 = sld [smem:[#allocation28_spill]]  ;;  %s2086_s4 = scalar_lea.sflag [#allocation8], %s3604_s6 }
 0x71f   : > { %s4385_s10 = sld [smem:[#allocation47_spill]] }
 0x723   : > { %s2531_s2 = sshll.u32 %s4382_s8, 4 }
 0x724   : > { %s2532_s1 = sshll.u32 %s4383_s0, 5 }
 0x725   : > { %s2097_s3 = sadd.s32 %s2532_s1, %s2531_s2  ;;  %s4386_s29 = smov %s4385_s10 }
 0x726   : > { %s2533_s23 = sshll.u32 %s2097_s3, 3  ;;  %s3169_s24 = scalar_lea.hbm %s4386_s29, 512 }
 0x727   : > { %s2099_s16 = scalar_lea.hbm %s4385_s10, %s2533_s23 }
 0x728   : > { %s2102_s9 = sshll.u32 %s2099_s16, 4  ;;  %s2103_s9 = int_to_ptr.hbm [resolvable:$true] %s2102_s9 }
 0x729   : > { %s3163_s15 = sshra.s32 %s2103_s9, 4  ;;  %s3164_s15 = int_to_ptr.hbm [resolvable:$true] %s3163_s15 }
 0x72a   : > { %s3165_s7 = scalar_lea.hbm %s3164_s15, 128  ;;  %p3170_p10 = scmp.lt.s32.totalorder %s3164_s15, %s4386_s29 }
 0x72b   : > { %p3166_p12 = scmp.ne.s32.totalorder %s3164_s15, %s3165_s7  ;;  %p3171_p11 = scmp.lt.s32.totalorder %s3169_s24, %s3165_s7 }
 0x72d   : > { %p3167_p13 = pnand %p3166_p12, %p3557_p7  ;;  %p3172_p6 = por %p3171_p11, %p3170_p10 }
 0x72f   : > { %p3168_p9 = pneg %p3167_p13 }
 0x731   : > { %p3173_p8 = pnand %p3172_p6, %p3168_p9 }
 0x733   : > { %3176 = shalt.err (!%p3173_p8)
}
 0x734   : > { %s3316_s6 = smov 128   ;;  %s3317_s0 = smov 8  }
 0x735   : > { %2713 = dma.vmem_to_hbm [thread:$0]  (%p3557_p7), %s2101_s5, 2048, %s2103_s9, %s2086_s4, %s3316_s6, %s3316_s6, %s3317_s0  }
 0x736 PF: > { %s4387_s2 = sld [smem:[#allocation25_spill]]  ;;  %p2746_p2 = scmp.ge.s32.totalorder %s3303_s21, 2 }
 0x738   : > { %p2736_p3 = pnand %p2746_p2, %p3561_p0 }
 0x73a   : > { %p2737_p5 = pneg %p2736_p3 }
 0x73c   : > { %s2117_s3 = sand.u32 1, %s4387_s2  }
 0x73d   : > { %s2118_s23 = scalar_lea.sflag [#allocation8], %s2117_s3 }
 0x73e   : > { %3250 = dma.done.wait (%p2737_p5), %s2118_s23, 2048  }
 0x73f   : > { %3252 = vsyncadd (%p2737_p5), %s2118_s23, 4294965248  ;;  %s30_s21 = sadd.s32 1, %s3303_s21   ;;  %s4390_s30 = sld [smem:[#allocation24_spill]] }
 0x740   : > { %p4239_p4 = scmp.ge.s32.totalorder %s30_s21, 10   ;;  %s4391_s17 = smov %s3577_s12 }
 0x741   : > { %s4392_s16 = sld [smem:[#allocation29_spill]]  ;;  %s4395_s10 = smov %s3263_s11 }
 0x742   : > { %s4393_s5 = sld [smem:[#allocation34_spill]]  ;;  %s4396_s11 = smov %s3582_s19 }
 0x743   : > { %s4394_s22 = sld [smem:[#allocation37_spill]]  ;;  %s4397_s12 = smov %s3271_s13 }
 0x744   : > { %s4398_s13 = smov %s3275_s14  ;;  %s4399_s14 = smov %s4391_s17 }
 0x745   : > { %s4400_s15 = smov %s3291_s18  ;;  %s4401_s17 = smov %s3299_s20 }
 0x746   : > { %s4402_s18 = smov %s4406_s27  ;;  %29 = sbr.rel (!%p4239_p4) target bundleno = 25 (0x19), region = 145 }
 0x748   : > { %s4403_s19 = smov %s4393_s5 }
 0x749   : > { %s4404_s20 = smov %s4394_s22 }
 0x74b   :  { %2124 = vsyncpa [#allocation7], 1 }
 0x74c   :  { %2126 = vsyncpa [#allocation7 + $0x1], 1 }
 0x74d   :  { %2127 = vsyncpa [#allocation10], 1 }
 0x74e   :  { %2129 = vsyncpa [#allocation10 + $0x1], 1 }
 0x74f   :  { %2130 = vsyncpa [#allocation13], 1 }
 0x750   :  { %2131 = vsyncpa [#allocation16], 1 }
 0x751   :  { %2132 = vsyncpa [#allocation8], 1 }
 0x752   :  { %2134 = vsyncpa [#allocation8 + $0x1], 1 }

</bundles_post_ra>
